<compile_context>
chip_gen: v7x
topology: tpu7x:2x2x1
jax: 0.10.0
libtpu: 0.0.40
codegen_flags: <defaults>
</compile_context>

<pallas_src>
import functools

import jax
import jax.numpy as jnp
from jax.experimental import pallas as pl
from jax.experimental.pallas import tpu as pltpu

KSIZE = 3
BN_EPS = 1e-5


def _conv_tile(x_ref, dup_ref, w_ref, rt, *, trin, h, w_in, cin, n_rt):
    """Nearest x2 upsample + zero-pad(1) + 3x3 conv (no bias) for one row tile.

    x_ref : (1, H*Cin, W) f32, row-major (row, channel) ordering, resident per batch.
    dup   : (W, 2W) bf16 0/1 column-duplication matrix (horizontal nearest x2).
    w_ref : (Cout, 9*Cin) bf16 conv weights, tap-major (ky*3+kx)*Cin + ci.
    Returns (Cout, M) f32, M = 2*trin*2W output pixels fused on the lane axis
    (output rows [2*rt*trin, 2*(rt+1)*trin)).
    """
    wu = 2 * w_in
    m = 2 * trin * wu

    # ---- input window: trin rows + one halo row above/below (pad + bf16 cast in-kernel)
    row0 = rt * trin
    main_start = row0 * cin
    if (trin * cin) % 8 == 0:
        main_start = pl.multiple_of(main_start, 8)
    main = x_ref[0, pl.ds(main_start, trin * cin), :]
    top_start = jnp.maximum(row0 - 1, 0) * cin
    top = x_ref[0, pl.ds(top_start, cin), :]
    top = jnp.where(rt == 0, jnp.zeros_like(top), top)          # vertical zero pad (top)
    bot_start = jnp.minimum(row0 + trin, h - 1) * cin
    bot = x_ref[0, pl.ds(bot_start, cin), :]
    bot = jnp.where(rt == n_rt - 1, jnp.zeros_like(bot), bot)   # vertical zero pad (bottom)
    xw = jnp.concatenate([top, main, bot], axis=0).astype(jnp.bfloat16)  # ((trin+2)*Cin, W)

    # ---- horizontal x2: one tiny (W, 2W) 0/1 matmul (exact bf16 pass-through) ----
    hdup = jnp.dot(xw, dup_ref[...],
                   preferred_element_type=jnp.float32).astype(jnp.bfloat16)  # ((trin+2)*Cin, 2W)

    # ---- vertical x2 + vertical halo + fuse spatial onto lanes: pure replication ----
    # fused layout: lane 0 / lane Lu+1 are zero guards, lanes 1..Lu hold the
    # (2*trin+2) upsampled rows of this tile back to back (pitch 2W).
    zcol = jnp.zeros((cin, 1), jnp.bfloat16)
    pieces = [zcol]
    for rr in range(2 * trin + 2):
        l = (rr + 1) // 2                      # static source row inside the window
        pieces.append(hdup[l * cin:(l + 1) * cin, :])
    pieces.append(zcol)
    up = jnp.concatenate(pieces, axis=1)       # (Cin, (2*trin+2)*2W + 2) bf16

    # ---- column-edge masks (the conv's horizontal zero pad; row pitch stays 2W) ----
    col = jax.lax.broadcasted_iota(jnp.int32, (1, m), 1) % wu
    mask_l = (col > 0).astype(jnp.bfloat16)        # zeroes output col 0     (kx == 0 taps)
    mask_r = (col < wu - 1).astype(jnp.bfloat16)   # zeroes output col 2W-1  (kx == 2 taps)

    # ---- im2col: 9 static lane-shifted slices; 3x3 conv as ONE MXU matmul ----
    taps = []
    for ky in range(KSIZE):
        for kx in range(KSIZE):
            sl = up[:, ky * wu + kx: ky * wu + kx + m]           # (Cin, M) bf16
            if kx == 0:
                sl = sl * mask_l
            elif kx == 2:
                sl = sl * mask_r
            taps.append(sl)
    rhs = jnp.concatenate(taps, axis=0)                          # (9*Cin, M) bf16
    return jnp.dot(w_ref[...], rhs, preferred_element_type=jnp.float32)   # (Cout, M) f32


def _stats_kernel(x_ref, dup_ref, w_ref, s_ref, *, trin, h, w_in, cin, cout, coutp, n_rt):
    """Pass 1: per-channel sum / sum-of-squares of the bias-free conv output.

    s_ref block (1, 2, COUTP) is resident across the row-tile ('arbitrary') axis and is
    written back to HBM once per batch item (one lane-dense store, no tiny DMAs).
    """
    rt = pl.program_id(1)
    r = _conv_tile(x_ref, dup_ref, w_ref, rt,
                   trin=trin, h=h, w_in=w_in, cin=cin, n_rt=n_rt)
    s1 = jnp.sum(r, axis=1)                        # (Cout,)
    s2 = jnp.sum(r * r, axis=1)                    # (Cout,)
    part = jnp.stack([s1, s2], axis=0)             # (2, Cout)  channels on lanes
    if coutp > cout:
        part = jnp.concatenate(
            [part, jnp.zeros((2, coutp - cout), jnp.float32)], axis=1)   # (2, COUTP)

    @pl.when(rt == 0)
    def _():
        s_ref[0] = jnp.zeros_like(s_ref[0])

    s_ref[0] = s_ref[0] + part


def _conv_bn_elu_kernel(x_ref, dup_ref, w_ref, scale_ref, shift_ref, o_ref, *,
                        trin, h, w_in, cin, n_rt):
    """Pass 2: recompute the conv and fuse BN affine + ELU into the final store."""
    rt = pl.program_id(1)
    r = _conv_tile(x_ref, dup_ref, w_ref, rt,
                   trin=trin, h=h, w_in=w_in, cin=cin, n_rt=n_rt)
    z = r * scale_ref[...] + shift_ref[...]
    # ELU(alpha=1).  exp(z)-1 (not expm1) keeps the Mosaic lowering to a plain EUP exp;
    # the precision delta near 0 is orders of magnitude below the test tolerance.
    o_ref[0] = jnp.where(z > 0, z, jnp.exp(z) - 1.0)


def _pick_row_tile(h, wu, max_lanes=2048):
    """Largest divisor of H whose output tile stays in the 512-2048 lane sweet spot."""
    divs = [t for t in range(1, h + 1) if h % t == 0]
    good = [t for t in divs
            if 2 * t * wu <= max_lanes and ((2 * t * wu) % 128 == 0 or t == h)]
    if good:
        return max(good)
    fits = [t for t in divs if 2 * t * wu <= max_lanes]
    return max(fits) if fits else 1


def upconv_forward(x_nchw, w_hwio, bias, gamma, beta, *, scale=2):
    """UpConv forward: (N, Cin, H, W) f32 -> (N, Cout, 2H, 2W) f32 (NCHW in/out)."""
    assert scale == 2, "kernel is specialized to nearest-neighbour x2 upsampling"
    del bias  # train-mode BatchNorm removes any per-channel constant: conv bias cancels.
    n, cin, h, w = x_nchw.shape
    cout = w_hwio.shape[-1]
    hu, wu = scale * h, scale * w

    trin = _pick_row_tile(h, wu)            # input rows per tile (-> 2*trin output rows)
    n_rt = h // trin
    m = 2 * trin * wu                       # output pixels per tile (lane axis)
    coutp = ((cout + 127) // 128) * 128     # lane-dense stats width

    # Only wrapper-side data movement: (N, Cin, H, W) -> (N, H*Cin, W) so row/channel
    # ordering makes every in-kernel window read and row replication a contiguous slice.
    xt = jnp.transpose(x_nchw, (0, 2, 1, 3)).reshape(n, h * cin, w)

    # Conv weights (HWIO) -> (Cout, 9*Cin), tap-major (ky, kx, ci); bf16 MXU operand.
    wmat = jnp.transpose(w_hwio, (3, 0, 1, 2)).reshape(cout, 9 * cin).astype(jnp.bfloat16)
    # (W, 2W) 0/1 column-duplication matrix: horizontal nearest x2.
    dup = (jnp.arange(w)[:, None] == (jnp.arange(wu)[None, :] // 2)).astype(jnp.bfloat16)

    try:  # derive the scoped-VMEM budget from the actual chip (64 MiB/TC on v7x)
        vmem_cap = int(pltpu.get_tpu_info().vmem_capacity_bytes)
    except Exception:
        vmem_cap = 64 * 1024 * 1024
    vmem_limit = int(min(vmem_cap * 5 // 8, 80 * 1024 * 1024))

    x_spec = pl.BlockSpec((1, h * cin, w), lambda b, r_: (b, 0, 0))   # resident per batch
    dup_spec = pl.BlockSpec((w, wu), lambda b, r_: (0, 0))
    w_spec = pl.BlockSpec((cout, 9 * cin), lambda b, r_: (0, 0))

    # ---- pass 1: statistics only (no conv output written to HBM) ----
    kern1 = functools.partial(_stats_kernel, trin=trin, h=h, w_in=w, cin=cin,
                              cout=cout, coutp=coutp, n_rt=n_rt)
    sums = pl.pallas_call(
        kern1,
        grid=(n, n_rt),
        in_specs=[x_spec, dup_spec, w_spec],
        out_specs=pl.BlockSpec((1, 2, coutp), lambda b, r_: (b, 0, 0)),
        out_shape=jax.ShapeDtypeStruct((n, 2, coutp), jnp.float32),
        compiler_params=pltpu.CompilerParams(
            dimension_semantics=("parallel", "arbitrary"),
            vmem_limit_bytes=vmem_limit),
    )(xt, dup, wmat)

    # ---- tiny cross-tile / cross-batch BN reduction (training statistics) ----
    count = n * hu * wu
    s1 = jnp.sum(sums[:, 0, :cout], axis=0)
    s2 = jnp.sum(sums[:, 1, :cout], axis=0)
    mean_c = s1 / count                          # mean of the bias-free conv output
    var = s2 / count - mean_c * mean_c           # bias-free sums avoid cancellation
    inv = jax.lax.rsqrt(var + BN_EPS)
    scale_c = (gamma * inv).reshape(cout, 1).astype(jnp.float32)
    shift_c = (beta - mean_c * gamma * inv).reshape(cout, 1).astype(jnp.float32)

    # ---- pass 2: recompute conv, fused BN affine + ELU, lane-dense final store ----
    kern2 = functools.partial(_conv_bn_elu_kernel, trin=trin, h=h, w_in=w, cin=cin,
                              n_rt=n_rt)
    out = pl.pallas_call(
        kern2,
        grid=(n, n_rt),
        in_specs=[x_spec, dup_spec, w_spec,
                  pl.BlockSpec((cout, 1), lambda b, r_: (0, 0)),
                  pl.BlockSpec((cout, 1), lambda b, r_: (0, 0))],
        out_specs=pl.BlockSpec((1, cout, m), lambda b, r_: (b, 0, r_)),
        out_shape=jax.ShapeDtypeStruct((n, cout, hu * wu), jnp.float32),
        compiler_params=pltpu.CompilerParams(
            dimension_semantics=("parallel", "parallel"),
            vmem_limit_bytes=vmem_limit),
    )(xt, dup, wmat, scale_c, shift_c)

    return out.reshape(n, cout, hu, wu)   # free reshape; still NCHW


def upconv_reference(x_nchw, w_hwio, bias, gamma, beta, scale=2):
    """Pure-JAX reference.  Uses the same bf16-rounded x / w as the kernel's matmuls."""
    x = x_nchw.astype(jnp.bfloat16).astype(jnp.float32)
    wq = w_hwio.astype(jnp.bfloat16).astype(jnp.float32)
    x = jnp.transpose(x, (0, 2, 3, 1))
    x = jnp.repeat(jnp.repeat(x, scale, axis=1), scale, axis=2)
    x = jnp.pad(x, ((0, 0), (1, 1), (1, 1), (0, 0)))
    y = jax.lax.conv_general_dilated(
        x, wq, window_strides=(1, 1), padding="VALID",
        dimension_numbers=("NHWC", "HWIO", "NHWC"))
    y = y + bias
    mean = jnp.mean(y, axis=(0, 1, 2), keepdims=True)
    var = jnp.mean((y - mean) ** 2, axis=(0, 1, 2), keepdims=True)
    y = (y - mean) * jax.lax.rsqrt(var + BN_EPS)
    y = y * gamma + beta
    y = jnp.where(y > 0, y, jnp.exp(y) - 1.0)
    return jnp.transpose(y, (0, 3, 1, 2))


if __name__ == "__main__":
    key = jax.random.PRNGKey(0)
    k_x, k_w, k_b = jax.random.split(key, 3)

    N, Cin, H, W = 2, 4, 16, 16
    Cout = 8
    scale = 2

    x = jax.random.normal(k_x, (N, Cin, H, W), dtype=jnp.float32)
    w = 0.1 * jax.random.normal(k_w, (KSIZE, KSIZE, Cin, Cout), dtype=jnp.float32)
    b = 0.01 * jax.random.normal(k_b, (Cout,), dtype=jnp.float32)
    # BatchNorm2d default init: weight=1, bias=0
    gamma = jnp.ones((Cout,), dtype=jnp.float32)
    beta = jnp.zeros((Cout,), dtype=jnp.float32)

    out = upconv_forward(x, w, b, gamma, beta, scale=scale)
    out = jax.block_until_ready(out)

    ref = upconv_reference(x, w, b, gamma, beta, scale=scale)
    assert out.shape == (N, Cout, H * scale, W * scale), out.shape
    err = float(jnp.max(jnp.abs(out - ref)))
    assert err < 5e-4, err

    # TODO(synk): BatchNorm2d's running_mean/running_var momentum update is a training
    # side effect on module state, not part of the returned tensor; not modeled here.
    print("KERNEL_OK")
</pallas_src>

<mosaic_0001>
module attributes {stable_mosaic.version = 11 : i64} {
  func.func @_stats_kernel(%arg0: i32, %arg1: i32, %arg2: memref<1x64x16xf32, #tpu.memory_space<vmem>>, %arg3: memref<16x32xbf16, #tpu.memory_space<vmem>>, %arg4: memref<8x36xbf16, #tpu.memory_space<vmem>>, %arg5: memref<1x2x128xf32, #tpu.memory_space<vmem>>) attributes {dimension_semantics = [#tpu.dimension_semantics<parallel>, #tpu.dimension_semantics<arbitrary>], iteration_bounds = array<i64: 2, 1>, scalar_prefetch = 0 : i64, scratch_operands = 0 : i64, tpu.core_type = #tpu.core_type<tc>, window_params = [{transform_indices = @transform_0, window_bounds = array<i64: 1, 64, 16>}, {pipeline_mode = #tpu.pipeline_mode<synchronous>, transform_indices = @transform_1, window_bounds = array<i64: 16, 32>}, {pipeline_mode = #tpu.pipeline_mode<synchronous>, transform_indices = @transform_2, window_bounds = array<i64: 8, 36>}, {transform_indices = @transform_3, window_bounds = array<i64: 1, 2, 128>}]} {
    %c16_i32 = arith.constant 16 : i32
    %0 = arith.muli %arg1, %c16_i32 : i32
    %c4_i32 = arith.constant 4 : i32
    %1 = arith.muli %0, %c4_i32 : i32
    %2 = tpu.assume_multiple %1, 8 : i32
    %c0 = arith.constant 0 : index
    %3 = arith.index_cast %2 : i32 to index
    %c0_0 = arith.constant 0 : index
    %4 = vector.load %arg2[%c0, %3, %c0_0] : memref<1x64x16xf32, #tpu.memory_space<vmem>>, vector<1x64x16xf32>
    %5 = vector.shape_cast %4 : vector<1x64x16xf32> to vector<64x16xf32>
    %c1_i32 = arith.constant 1 : i32
    %6 = arith.subi %0, %c1_i32 : i32
    %c0_i32 = arith.constant 0 : i32
    %7 = arith.maxsi %6, %c0_i32 : i32
    %c4_i32_1 = arith.constant 4 : i32
    %8 = arith.muli %7, %c4_i32_1 : i32
    %c0_2 = arith.constant 0 : index
    %9 = arith.index_cast %8 : i32 to index
    %c0_3 = arith.constant 0 : index
    %10 = vector.load %arg2[%c0_2, %9, %c0_3] : memref<1x64x16xf32, #tpu.memory_space<vmem>>, vector<1x4x16xf32>
    %11 = vector.shape_cast %10 : vector<1x4x16xf32> to vector<4x16xf32>
    %c0_i32_4 = arith.constant 0 : i32
    %12 = arith.cmpi eq, %arg1, %c0_i32_4 : i32
    %cst = arith.constant 0.000000e+00 : f32
    %13 = vector.broadcast %cst : f32 to vector<4x16xf32>
    %14 = arith.select %12, %13, %11 : vector<4x16xf32>
    %c16_i32_5 = arith.constant 16 : i32
    %15 = arith.addi %0, %c16_i32_5 : i32
    %c15_i32 = arith.constant 15 : i32
    %16 = arith.minsi %15, %c15_i32 : i32
    %c4_i32_6 = arith.constant 4 : i32
    %17 = arith.muli %16, %c4_i32_6 : i32
    %c0_7 = arith.constant 0 : index
    %18 = arith.index_cast %17 : i32 to index
    %c0_8 = arith.constant 0 : index
    %19 = vector.load %arg2[%c0_7, %18, %c0_8] : memref<1x64x16xf32, #tpu.memory_space<vmem>>, vector<1x4x16xf32>
    %20 = vector.shape_cast %19 : vector<1x4x16xf32> to vector<4x16xf32>
    %c0_i32_9 = arith.constant 0 : i32
    %21 = arith.cmpi eq, %arg1, %c0_i32_9 : i32
    %cst_10 = arith.constant 0.000000e+00 : f32
    %22 = vector.broadcast %cst_10 : f32 to vector<4x16xf32>
    %23 = arith.select %21, %22, %20 : vector<4x16xf32>
    %24 = tpu.concatenate %14, %5, %23 in 0 : vector<4x16xf32>, vector<64x16xf32>, vector<4x16xf32> -> vector<72x16xf32>
    %25 = arith.truncf %24 : vector<72x16xf32> to vector<72x16xbf16>
    %c0_11 = arith.constant 0 : index
    %c0_12 = arith.constant 0 : index
    %26 = vector.load %arg3[%c0_11, %c0_12] : memref<16x32xbf16, #tpu.memory_space<vmem>>, vector<16x32xbf16>
    %cst_13 = arith.constant dense<0.000000e+00> : vector<72x32xf32>
    %27 = tpu.matmul %25, %26, %cst_13 {dimension_numbers = #tpu.dot_dimension_numbers<[1], [0], [0], [1], [0, 0, 1, 1], [], []>} : vector<72x16xbf16>, vector<16x32xbf16>, vector<72x32xf32> -> vector<72x32xf32>
    %28 = arith.truncf %27 : vector<72x32xf32> to vector<72x32xbf16>
    %cst_14 = arith.constant 0.000000e+00 : bf16
    %29 = vector.broadcast %cst_14 : bf16 to vector<4x1xbf16>
    %30 = vector.extract_strided_slice %28 {offsets = [0, 0], sizes = [4, 32], strides = [1, 1]} : vector<72x32xbf16> to vector<4x32xbf16>
    %31 = vector.extract_strided_slice %28 {offsets = [4, 0], sizes = [4, 32], strides = [1, 1]} : vector<72x32xbf16> to vector<4x32xbf16>
    %32 = vector.extract_strided_slice %28 {offsets = [4, 0], sizes = [4, 32], strides = [1, 1]} : vector<72x32xbf16> to vector<4x32xbf16>
    %33 = vector.extract_strided_slice %28 {offsets = [8, 0], sizes = [4, 32], strides = [1, 1]} : vector<72x32xbf16> to vector<4x32xbf16>
    %34 = vector.extract_strided_slice %28 {offsets = [8, 0], sizes = [4, 32], strides = [1, 1]} : vector<72x32xbf16> to vector<4x32xbf16>
    %35 = vector.extract_strided_slice %28 {offsets = [12, 0], sizes = [4, 32], strides = [1, 1]} : vector<72x32xbf16> to vector<4x32xbf16>
    %36 = vector.extract_strided_slice %28 {offsets = [12, 0], sizes = [4, 32], strides = [1, 1]} : vector<72x32xbf16> to vector<4x32xbf16>
    %37 = vector.extract_strided_slice %28 {offsets = [16, 0], sizes = [4, 32], strides = [1, 1]} : vector<72x32xbf16> to vector<4x32xbf16>
    %38 = vector.extract_strided_slice %28 {offsets = [16, 0], sizes = [4, 32], strides = [1, 1]} : vector<72x32xbf16> to vector<4x32xbf16>
    %39 = vector.extract_strided_slice %28 {offsets = [20, 0], sizes = [4, 32], strides = [1, 1]} : vector<72x32xbf16> to vector<4x32xbf16>
    %40 = vector.extract_strided_slice %28 {offsets = [20, 0], sizes = [4, 32], strides = [1, 1]} : vector<72x32xbf16> to vector<4x32xbf16>
    %41 = vector.extract_strided_slice %28 {offsets = [24, 0], sizes = [4, 32], strides = [1, 1]} : vector<72x32xbf16> to vector<4x32xbf16>
    %42 = vector.extract_strided_slice %28 {offsets = [24, 0], sizes = [4, 32], strides = [1, 1]} : vector<72x32xbf16> to vector<4x32xbf16>
    %43 = vector.extract_strided_slice %28 {offsets = [28, 0], sizes = [4, 32], strides = [1, 1]} : vector<72x32xbf16> to vector<4x32xbf16>
    %44 = vector.extract_strided_slice %28 {offsets = [28, 0], sizes = [4, 32], strides = [1, 1]} : vector<72x32xbf16> to vector<4x32xbf16>
    %45 = vector.extract_strided_slice %28 {offsets = [32, 0], sizes = [4, 32], strides = [1, 1]} : vector<72x32xbf16> to vector<4x32xbf16>
    %46 = vector.extract_strided_slice %28 {offsets = [32, 0], sizes = [4, 32], strides = [1, 1]} : vector<72x32xbf16> to vector<4x32xbf16>
    %47 = vector.extract_strided_slice %28 {offsets = [36, 0], sizes = [4, 32], strides = [1, 1]} : vector<72x32xbf16> to vector<4x32xbf16>
    %48 = vector.extract_strided_slice %28 {offsets = [36, 0], sizes = [4, 32], strides = [1, 1]} : vector<72x32xbf16> to vector<4x32xbf16>
    %49 = vector.extract_strided_slice %28 {offsets = [40, 0], sizes = [4, 32], strides = [1, 1]} : vector<72x32xbf16> to vector<4x32xbf16>
    %50 = vector.extract_strided_slice %28 {offsets = [40, 0], sizes = [4, 32], strides = [1, 1]} : vector<72x32xbf16> to vector<4x32xbf16>
    %51 = vector.extract_strided_slice %28 {offsets = [44, 0], sizes = [4, 32], strides = [1, 1]} : vector<72x32xbf16> to vector<4x32xbf16>
    %52 = vector.extract_strided_slice %28 {offsets = [44, 0], sizes = [4, 32], strides = [1, 1]} : vector<72x32xbf16> to vector<4x32xbf16>
    %53 = vector.extract_strided_slice %28 {offsets = [48, 0], sizes = [4, 32], strides = [1, 1]} : vector<72x32xbf16> to vector<4x32xbf16>
    %54 = vector.extract_strided_slice %28 {offsets = [48, 0], sizes = [4, 32], strides = [1, 1]} : vector<72x32xbf16> to vector<4x32xbf16>
    %55 = vector.extract_strided_slice %28 {offsets = [52, 0], sizes = [4, 32], strides = [1, 1]} : vector<72x32xbf16> to vector<4x32xbf16>
    %56 = vector.extract_strided_slice %28 {offsets = [52, 0], sizes = [4, 32], strides = [1, 1]} : vector<72x32xbf16> to vector<4x32xbf16>
    %57 = vector.extract_strided_slice %28 {offsets = [56, 0], sizes = [4, 32], strides = [1, 1]} : vector<72x32xbf16> to vector<4x32xbf16>
    %58 = vector.extract_strided_slice %28 {offsets = [56, 0], sizes = [4, 32], strides = [1, 1]} : vector<72x32xbf16> to vector<4x32xbf16>
    %59 = vector.extract_strided_slice %28 {offsets = [60, 0], sizes = [4, 32], strides = [1, 1]} : vector<72x32xbf16> to vector<4x32xbf16>
    %60 = vector.extract_strided_slice %28 {offsets = [60, 0], sizes = [4, 32], strides = [1, 1]} : vector<72x32xbf16> to vector<4x32xbf16>
    %61 = vector.extract_strided_slice %28 {offsets = [64, 0], sizes = [4, 32], strides = [1, 1]} : vector<72x32xbf16> to vector<4x32xbf16>
    %62 = vector.extract_strided_slice %28 {offsets = [64, 0], sizes = [4, 32], strides = [1, 1]} : vector<72x32xbf16> to vector<4x32xbf16>
    %63 = vector.extract_strided_slice %28 {offsets = [68, 0], sizes = [4, 32], strides = [1, 1]} : vector<72x32xbf16> to vector<4x32xbf16>
    %64 = tpu.concatenate %29, %30, %31, %32, %33, %34, %35, %36, %37, %38, %39, %40, %41, %42, %43, %44 in 1 : vector<4x1xbf16>, vector<4x32xbf16>, vector<4x32xbf16>, vector<4x32xbf16>, vector<4x32xbf16>, vector<4x32xbf16>, vector<4x32xbf16>, vector<4x32xbf16>, vector<4x32xbf16>, vector<4x32xbf16>, vector<4x32xbf16>, vector<4x32xbf16>, vector<4x32xbf16>, vector<4x32xbf16>, vector<4x32xbf16>, vector<4x32xbf16> -> vector<4x481xbf16>
    %65 = tpu.concatenate %45, %46, %47, %48, %49, %50, %51, %52, %53, %54, %55, %56, %57, %58, %59, %60 in 1 : vector<4x32xbf16>, vector<4x32xbf16>, vector<4x32xbf16>, vector<4x32xbf16>, vector<4x32xbf16>, vector<4x32xbf16>, vector<4x32xbf16>, vector<4x32xbf16>, vector<4x32xbf16>, vector<4x32xbf16>, vector<4x32xbf16>, vector<4x32xbf16>, vector<4x32xbf16>, vector<4x32xbf16>, vector<4x32xbf16>, vector<4x32xbf16> -> vector<4x512xbf16>
    %66 = tpu.concatenate %61, %62, %63, %29 in 1 : vector<4x32xbf16>, vector<4x32xbf16>, vector<4x32xbf16>, vector<4x1xbf16> -> vector<4x97xbf16>
    %67 = tpu.concatenate %64, %65, %66 in 1 : vector<4x481xbf16>, vector<4x512xbf16>, vector<4x97xbf16> -> vector<4x1090xbf16>
    %68 = tpu.iota {dimensions = array<i32: 1>} : vector<1x1024xi32>
    %c32_i32 = arith.constant 32 : i32
    %c0_i32_15 = arith.constant 0 : i32
    %69 = arith.cmpi eq, %c32_i32, %c0_i32_15 : i32
    %c1_i32_16 = arith.constant 1 : i32
    %70 = arith.select %69, %c1_i32_16, %c32_i32 : i32
    %71 = vector.broadcast %70 : i32 to vector<1x1024xi32>
    %72 = arith.remsi %68, %71 : vector<1x1024xi32>
    %c0_i32_17 = arith.constant 0 : i32
    %73 = vector.broadcast %c0_i32_17 : i32 to vector<1x1024xi32>
    %74 = arith.cmpi ne, %72, %73 : vector<1x1024xi32>
    %c0_i32_18 = arith.constant 0 : i32
    %75 = vector.broadcast %c0_i32_18 : i32 to vector<1x1024xi32>
    %76 = arith.cmpi slt, %72, %75 : vector<1x1024xi32>
    %c0_i32_19 = arith.constant 0 : i32
    %77 = arith.cmpi slt, %70, %c0_i32_19 : i32
    %78 = vector.broadcast %77 : i1 to vector<1x1024xi1>
    %79 = vector.broadcast %78 : vector<1x1024xi1> to vector<1x1024xi1>
    %80 = arith.xori %76, %79 : vector<1x1024xi1>
    %81 = arith.andi %80, %74 : vector<1x1024xi1>
    %82 = vector.broadcast %70 : i32 to vector<1x1024xi32>
    %83 = arith.addi %72, %82 : vector<1x1024xi32>
    %84 = arith.select %81, %83, %72 : vector<1x1024xi1>, vector<1x1024xi32>
    %c0_i32_20 = arith.constant 0 : i32
    %85 = vector.broadcast %c0_i32_20 : i32 to vector<1x1024xi32>
    %86 = arith.cmpi sgt, %84, %85 : vector<1x1024xi32>
    %87 = arith.extui %86 : vector<1x1024xi1> to vector<1x1024xi32>
    %88 = arith.sitofp %87 : vector<1x1024xi32> to vector<1x1024xf32>
    %89 = arith.truncf %88 : vector<1x1024xf32> to vector<1x1024xbf16>
    %c31_i32 = arith.constant 31 : i32
    %90 = vector.broadcast %c31_i32 : i32 to vector<1x1024xi32>
    %91 = arith.cmpi slt, %84, %90 : vector<1x1024xi32>
    %92 = arith.extui %91 : vector<1x1024xi1> to vector<1x1024xi32>
    %93 = arith.sitofp %92 : vector<1x1024xi32> to vector<1x1024xf32>
    %94 = arith.truncf %93 : vector<1x1024xf32> to vector<1x1024xbf16>
    %95 = vector.extract_strided_slice %67 {offsets = [0, 0], sizes = [4, 1024], strides = [1, 1]} : vector<4x1090xbf16> to vector<4x1024xbf16>
    %96 = vector.broadcast %89 : vector<1x1024xbf16> to vector<4x1024xbf16>
    %97 = arith.mulf %95, %96 : vector<4x1024xbf16>
    %98 = vector.extract_strided_slice %67 {offsets = [0, 1], sizes = [4, 1024], strides = [1, 1]} : vector<4x1090xbf16> to vector<4x1024xbf16>
    %99 = vector.extract_strided_slice %67 {offsets = [0, 2], sizes = [4, 1024], strides = [1, 1]} : vector<4x1090xbf16> to vector<4x1024xbf16>
    %100 = vector.broadcast %94 : vector<1x1024xbf16> to vector<4x1024xbf16>
    %101 = arith.mulf %99, %100 : vector<4x1024xbf16>
    %102 = vector.extract_strided_slice %67 {offsets = [0, 32], sizes = [4, 1024], strides = [1, 1]} : vector<4x1090xbf16> to vector<4x1024xbf16>
    %103 = vector.broadcast %89 : vector<1x1024xbf16> to vector<4x1024xbf16>
    %104 = arith.mulf %102, %103 : vector<4x1024xbf16>
    %105 = vector.extract_strided_slice %67 {offsets = [0, 33], sizes = [4, 1024], strides = [1, 1]} : vector<4x1090xbf16> to vector<4x1024xbf16>
    %106 = vector.extract_strided_slice %67 {offsets = [0, 34], sizes = [4, 1024], strides = [1, 1]} : vector<4x1090xbf16> to vector<4x1024xbf16>
    %107 = vector.broadcast %94 : vector<1x1024xbf16> to vector<4x1024xbf16>
    %108 = arith.mulf %106, %107 : vector<4x1024xbf16>
    %109 = vector.extract_strided_slice %67 {offsets = [0, 64], sizes = [4, 1024], strides = [1, 1]} : vector<4x1090xbf16> to vector<4x1024xbf16>
    %110 = vector.broadcast %89 : vector<1x1024xbf16> to vector<4x1024xbf16>
    %111 = arith.mulf %109, %110 : vector<4x1024xbf16>
    %112 = vector.extract_strided_slice %67 {offsets = [0, 65], sizes = [4, 1024], strides = [1, 1]} : vector<4x1090xbf16> to vector<4x1024xbf16>
    %113 = vector.extract_strided_slice %67 {offsets = [0, 66], sizes = [4, 1024], strides = [1, 1]} : vector<4x1090xbf16> to vector<4x1024xbf16>
    %114 = vector.broadcast %94 : vector<1x1024xbf16> to vector<4x1024xbf16>
    %115 = arith.mulf %113, %114 : vector<4x1024xbf16>
    %116 = tpu.concatenate %97, %98, %101, %104, %105, %108, %111, %112, %115 in 0 : vector<4x1024xbf16>, vector<4x1024xbf16>, vector<4x1024xbf16>, vector<4x1024xbf16>, vector<4x1024xbf16>, vector<4x1024xbf16>, vector<4x1024xbf16>, vector<4x1024xbf16>, vector<4x1024xbf16> -> vector<36x1024xbf16>
    %c0_21 = arith.constant 0 : index
    %c0_22 = arith.constant 0 : index
    %117 = vector.load %arg4[%c0_21, %c0_22] : memref<8x36xbf16, #tpu.memory_space<vmem>>, vector<8x36xbf16>
    %cst_23 = arith.constant dense<0.000000e+00> : vector<8x1024xf32>
    %118 = tpu.matmul %117, %116, %cst_23 {dimension_numbers = #tpu.dot_dimension_numbers<[1], [0], [0], [1], [0, 0, 1, 1], [], []>} : vector<8x36xbf16>, vector<36x1024xbf16>, vector<8x1024xf32> -> vector<8x1024xf32>
    %cst_24 = arith.constant dense<0.000000e+00> : vector<8xf32>
    %119 = vector.multi_reduction <add>, %118, %cst_24 [1] : vector<8x1024xf32> to vector<8xf32>
    %120 = arith.mulf %118, %118 : vector<8x1024xf32>
    %cst_25 = arith.constant dense<0.000000e+00> : vector<8xf32>
    %121 = vector.multi_reduction <add>, %120, %cst_25 [1] : vector<8x1024xf32> to vector<8xf32>
    %122 = vector.shape_cast %119 : vector<8xf32> to vector<1x8xf32>
    %123 = vector.shape_cast %121 : vector<8xf32> to vector<1x8xf32>
    %124 = tpu.concatenate %122, %123 in 0 : vector<1x8xf32>, vector<1x8xf32> -> vector<2x8xf32>
    %cst_26 = arith.constant 0.000000e+00 : f32
    %125 = vector.broadcast %cst_26 : f32 to vector<2x120xf32>
    %126 = tpu.concatenate %124, %125 in 1 : vector<2x8xf32>, vector<2x120xf32> -> vector<2x128xf32>
    %c0_i32_27 = arith.constant 0 : i32
    %127 = arith.cmpi eq, %arg1, %c0_i32_27 : i32
    %128 = arith.extui %127 : i1 to i32
    %c0_i32_28 = arith.constant 0 : i32
    %129 = arith.cmpi ne, %128, %c0_i32_28 : i32
    scf.if %129 {
      %cst_35 = arith.constant 0.000000e+00 : f32
      %136 = vector.broadcast %cst_35 : f32 to vector<2x128xf32>
      %c0_36 = arith.constant 0 : index
      %c0_37 = arith.constant 0 : index
      %c0_38 = arith.constant 0 : index
      %137 = vector.load %arg5[%c0_36, %c0_37, %c0_38] : memref<1x2x128xf32, #tpu.memory_space<vmem>>, vector<1x2x128xf32>
      %138 = vector.shape_cast %137 : vector<1x2x128xf32> to vector<2x128xf32>
      %139 = vector.shape_cast %136 : vector<2x128xf32> to vector<1x2x128xf32>
      tpu.vector_store %arg5[%c0_36, %c0_37, %c0_38], %139 {strides = array<i32>} : memref<1x2x128xf32, #tpu.memory_space<vmem>>, vector<1x2x128xf32>,
    } else {
    }
    %c0_29 = arith.constant 0 : index
    %c0_30 = arith.constant 0 : index
    %c0_31 = arith.constant 0 : index
    %130 = vector.load %arg5[%c0_29, %c0_30, %c0_31] : memref<1x2x128xf32, #tpu.memory_space<vmem>>, vector<1x2x128xf32>
    %131 = vector.shape_cast %130 : vector<1x2x128xf32> to vector<2x128xf32>
    %132 = arith.addf %131, %126 : vector<2x128xf32>
    %c0_32 = arith.constant 0 : index
    %c0_33 = arith.constant 0 : index
    %c0_34 = arith.constant 0 : index
    %133 = vector.load %arg5[%c0_32, %c0_33, %c0_34] : memref<1x2x128xf32, #tpu.memory_space<vmem>>, vector<1x2x128xf32>
    %134 = vector.shape_cast %133 : vector<1x2x128xf32> to vector<2x128xf32>
    %135 = vector.shape_cast %132 : vector<2x128xf32> to vector<1x2x128xf32>
    tpu.vector_store %arg5[%c0_32, %c0_33, %c0_34], %135 {strides = array<i32>} : memref<1x2x128xf32, #tpu.memory_space<vmem>>, vector<1x2x128xf32>,
    return
  }
  func.func @transform_0(%arg0: i32, %arg1: i32) -> (i32, i32, i32) {
    %c0_i32 = arith.constant 0 : i32
    %c0_i32_0 = arith.constant 0 : i32
    %c0_i32_1 = arith.constant 0 : i32
    return %arg0, %c0_i32, %c0_i32_0 : i32, i32, i32
  }
  func.func @transform_1(%arg0: i32, %arg1: i32) -> (i32, i32) {
    %c0_i32 = arith.constant 0 : i32
    %c0_i32_0 = arith.constant 0 : i32
    %c0_i32_1 = arith.constant 0 : i32
    return %c0_i32, %c0_i32_0 : i32, i32
  }
  func.func @transform_2(%arg0: i32, %arg1: i32) -> (i32, i32) {
    %c0_i32 = arith.constant 0 : i32
    %c0_i32_0 = arith.constant 0 : i32
    %c0_i32_1 = arith.constant 0 : i32
    return %c0_i32, %c0_i32_0 : i32, i32
  }
  func.func @transform_3(%arg0: i32, %arg1: i32) -> (i32, i32, i32) {
    %c0_i32 = arith.constant 0 : i32
    %c0_i32_0 = arith.constant 0 : i32
    %c0_i32_1 = arith.constant 0 : i32
    return %arg0, %c0_i32, %c0_i32_0 : i32, i32, i32
  }
}

</mosaic_0001>

<bundles_post_ra>
// kernel: tpu_custom_call.1
= control target key start
LH: loop header
LB: loop body
LE: loop exit
PB: predicated region body
PF: predicated region fallthrough
CT: control target
= control target key end

     0   :  { %8 = vsyncpa [#allocation3], 0  ;;  %s2921_s0 = inlined_call_operand.vmem [shape: f32[2,64,16], index: 0, kind: input, shape index: {}]   ;;  %s2922_s1 = inlined_call_operand.vmem [shape: bf16[16,32], index: 1, kind: input, shape index: {}]   ;;  %s2923_s2 = inlined_call_operand.vmem [shape: bf16[8,36], index: 2, kind: input, shape index: {}]   ;;  %s2924_s3 = inlined_call_operand.hbm [shape: f32[2,2,128], index: 3, kind: output, shape index: {}]  }
   0x1   :  { %10 = vsyncpa [#allocation3 + $0x1], 0  ;;  %s1984_s12 = smov 0   ;;  %s1986_s13 = smov 0  }
   0x2   :  { %s1988_s14 = smov 0   ;;  %s1990_s15 = smov 0  }
   0x3   :  { %s1992_s16 = smov 0   ;;  %s1994_s17 = smov 0  }
   0x4 LB: > { %s1717_s18 = sadd.s32 4294967295, %s1942_s17   ;;  %s1718_s19 = sadd.s32 4294967294, %s1942_s17   ;;  %s1942_s17 = sphi %s1994_s17, %s16_s17   ;;  %s1938_s16 = sphi %s1992_s16, %s2970_s16   ;;  %s1934_s15 = sphi %s1990_s15, %s2969_s15   ;;  %s1930_s14 = sphi %s1988_s14, %s2968_s14   ;;  %s1926_s13 = sphi %s1986_s13, %s2967_s13   ;;  %s1922_s12 = sphi %s1984_s12, %s2966_s12  }
   0x5   : > { %s28_s20 = sadd.s32 1, %s1938_s16  ;;  %s103_s21 = sadd.s32 1, %s1930_s14 }
   0x6   : > { %p30_p0 = scmp.ge.s32.totalorder %s28_s20, 2  ;;  %p113_p1 = scmp.ne.s32.totalorder %s1930_s14, %s1926_s13 }
   0x7   : > { %p114_p2 = scmp.eq.s32.totalorder %s1717_s18, 1  ;;  %p119_p3 = scmp.ne.s32.totalorder %s1926_s13, %s1922_s12 }
   0x8   : > { %s2972_s20 = smov (%p30_p0, %s28_s20), 0  ;;  %p120_p5 = scmp.eq.s32.totalorder %s1718_s19, 1 }
   0x9   : > { %p2024_p4 = por %p114_p2, %p113_p1  ;;  %s100_s23 = ssub.s32 %s1938_s16, %s2972_s20 }
   0xa   : > { %p1721_p6 = scmp.ge.s32.totalorder %s1942_s17, 1  ;;  %p101_p7 = scmp.eq.s32.totalorder %s100_s23, 0 }
   0xb   : > { %p2031_p8 = por %p120_p5, %p119_p3  ;;  %p152_p9 = scmp.lt.s32.totalorder %s1942_s17, 3 }
   0xc   : > { %s2037_s25 = scalar_select %p101_p7, %s1930_s14, %s103_s21  }
   0xd   : > { %p153_p10 = pnand %p1721_p6, %p152_p9 }
   0xf   : > { %156 = sbr.rel (%p153_p10) target bundleno = 1137 (0x471), region = 32 }
  0x16   : > { %v1863_v0 = vld [vmem:[%s2922_s1] sm:$0xff]   ;;  %v2925_v1 = vlaneseq  ;;  %v2926_v2 = vmov 0.0   ;;  %p176_p11 = scmp.lt.s32.totalorder %s1934_s15, 1  ;;  %vm1945_vm0 = vmmov 0   ;;  %vm219_vm1 = vcmask 1043456   ;;  %s1946_s6 = smov 2  }
  0x17   : > { %1767 = vmatprep.subr.bf16.mxu0 %v2926_v2  ;;  %1769 = vmatprep.mubr.msk.bf16.mxu0 %vm1945_vm0, %v2926_v2  ;;  %vm262_vm4 = vcmask 130048   ;;  %s1947_s7 = smov 32   ;;  %s1948_s8 = smov 34   ;;  %v245_v56 = vrot.slane %v2926_v2, 4 }
  0x18   : > { %1768 = vmatpush3.bf16.msra.mxu0 %v1863_v0  ;;  %v2047_v3 = vand.u32 127, %v2925_v1  ;;  %s177_s28 = scalar_select %p176_p11, %s1934_s15, 1 }
  0x19   : > { %s1949_s9 = smov 64   ;;  %s1950_s10 = smov 66  }
  0x1a   : > { %2940 = vst [vmem:[#allocation5_spill] sm:$0xff] %v2047_v3  ;;  %v549_v4 = vand.u32 31, %v2047_v3  ;;  %s1760_s29 = sshll.u32 %s177_s28, 6  ;;  %v539_v5 = vadd.s32 256, %v2047_v3  ;;  %v538_v6 = vadd.s32 128, %v2047_v3  ;;  %v541_v39 = vadd.s32 512, %v2047_v3 }
  0x1b   : > { %s2056_s5 = scalar_lea.vmem %s2921_s0, %s1760_s29  ;;  %v540_v40 = vadd.s32 384, %v2047_v3  ;;  %v542_v60 = vadd.s32 640, %v2047_v3  ;;  %s1951_s11 = smov 1  }
  0x1c   : > { %vm673_vm2 = vcmp.lt.s32.totalorder %v549_v4, 31  ;;  %vm641_vm3 = vcmp.gt.s32.totalorder %v549_v4, 0  ;;  %v185_v7 = vld [vmem:[%s2056_s5] sm:$0xff]  ;;  %v186_v8 = vld [vmem:[%s2056_s5 + $0x8] sm:$0xff]  ;;  %v187_v9 = vld [vmem:[%s2056_s5 + $0x10] sm:$0xff]  ;;  %v563_v17 = vand.u32 31, %v539_v5 }
  0x1d   : > { %v1740_v10 = vsel %vm673_vm2, 1.0, %v2926_v2  ;;  %v1732_v11 = vsel %vm641_vm3, 1.0, %v2926_v2  ;;  %v220_v12 = vrot.slane %v185_v7, 4  ;;  %v221_v13 = vrot.slane %v186_v8, 4  ;;  %v188_v14 = vld [vmem:[%s2056_s5 + $0x18] sm:$0xff]  ;;  %v189_v28 = vld [vmem:[%s2056_s5 + $0x20] sm:$0xff] }
  0x1e   : > { %v2064_v15 = vpack.c.bf16 %v1740_v10, %v1740_v10  ;;  %v2066_v16 = vpack.c.bf16 %v1732_v11, %v1732_v11  ;;  %v556_v18 = vand.u32 31, %v538_v6  ;;  %v223_v21 = vrot.slane %v187_v9, 4  ;;  %v190_v29 = vld [vmem:[%s2056_s5 + $0x28] sm:$0xff]  ;;  %v191_v43 = vld [vmem:[%s2056_s5 + $0x30] sm:$0xff]  ;;  %v192_v44 = vld [vmem:[%s2056_s5 + $0x38] sm:$0xff]  ;;  %s1952_s18 = smov 97  }
  0x1f   : > { %v222_v19 = vsel %vm219_vm1, %v220_v12, %v221_v13  ;;  %v247_v20 = vsel %vm219_vm1, 0.0, %v220_v12  ;;  %v225_v22 = vrot.slane %v188_v14, 4  ;;  %vm675_vm5 = vcmp.lt.s32.totalorder %v563_v17, 31  ;;  %s1953_s19 = smov 33   ;;  %s1954_s21 = smov 65  }
  0x20   : > { %721 = vrot.lane.b32.xlu0 %v2064_v15, %s1946_s6  ;;  %v249_v23 = vpack.c.bf16 %v222_v19, %v247_v20  ;;  %771 = vrot.lane.b32.xlu1 %v2066_v16, %s1947_s7  ;;  %vm674_vm6 = vcmp.lt.s32.totalorder %v556_v18, 31  ;;  %vm642_vm7 = vcmp.gt.s32.totalorder %v556_v18, 0  ;;  %vm643_vm8 = vcmp.gt.s32.totalorder %v563_v17, 0  ;;  %s1955_s23 = smov 96   ;;  %s1956_s26 = smov 95  }
  0x21   : > { %v224_v24 = vsel %vm219_vm1, %v221_v13, %v223_v21  ;;  %v226_v25 = vsel %vm219_vm1, %v223_v21, %v225_v22  ;;  %v1742_v26 = vsel %vm675_vm5, 1.0, %v2926_v2  ;;  %v1741_v27 = vsel %vm674_vm6, 1.0, %v2926_v2  ;;  %s1957_s27 = smov 127   ;;  %s1958_s28 = smov 62  }
  0x22   : > { %1770 = vmatmul.mubr.msk.bf16.vlgmr.msra.gmra.mrb[0].mxu0 %vm262_vm4, %v249_v23  ;;  %v2083_v30 = vpack.c.bf16 %v1742_v26, %v1742_v26  ;;  %v698_v31 = vpack.c.bf16 %v1741_v27, %v1741_v27  ;;  %v1733_v32 = vsel %vm642_vm7, 1.0, %v2926_v2  ;;  %v1734_v33 = vsel %vm643_vm8, 1.0, %v2926_v2  ;;  %s1959_s29 = smov 63   ;;  %s1960_s30 = smov 126  }
  0x23   : > { %1773 = vmatprep.mubr.msk.bf16.mxu0 %vm1945_vm0, %v2926_v2  ;;  %v250_v34 = vpack.c.bf16 %v226_v25, %v224_v24  ;;  %v2090_v35 = vpack.c.bf16 %v1733_v32, %v1733_v32  ;;  %v227_v36 = vrot.slane %v189_v28, 4  ;;  %v229_v37 = vrot.slane %v190_v29, 4  ;;  %s1961_s4 = smov 94  }
  0x24   : > { %725 = vrot.lane.b32.xlu0 %v2083_v30, %s1946_s6  ;;  %723 = vrot.lane.b32.xlu1 %v698_v31, %s1946_s6  ;;  %v2092_v38 = vpack.c.bf16 %v1734_v33, %v1734_v33  ;;  %v577_v45 = vand.u32 31, %v541_v39  ;;  %v570_v46 = vand.u32 31, %v540_v40  ;;  %v231_v48 = vrot.slane %v191_v43, 4 }
  0x25   : > { %v228_v41 = vsel %vm219_vm1, %v225_v22, %v227_v36  ;;  %v230_v42 = vsel %vm219_vm1, %v227_v36, %v229_v37  ;;  %v233_v49 = vrot.slane %v192_v44, 4  ;;  %v584_v0 = vand.u32 31, %v542_v60 }
  0x26   : > { %2941 = vst [vmem:[#allocation6_spill] sm:$0xff] %v2092_v38  ;;  %v251_v47 = vpack.c.bf16 %v230_v42, %v228_v41  ;;  %vm677_vm9 = vcmp.lt.s32.totalorder %v577_v45, 31  ;;  %vm676_vm10 = vcmp.lt.s32.totalorder %v570_v46, 31  ;;  %v232_v50 = vsel %vm219_vm1, %v229_v37, %v231_v48 }
  0x27   : > { %v234_v51 = vsel %vm219_vm1, %v231_v48, %v233_v49  ;;  %v1744_v52 = vsel %vm677_vm9, 1.0, %v2926_v2  ;;  %v1743_v53 = vsel %vm676_vm10, 1.0, %v2926_v2  ;;  %vm644_vm11 = vcmp.gt.s32.totalorder %v570_v46, 0 }
  0x28   : > { %773 = vrot.lane.b32.xlu0 %v2090_v35, %s1947_s7  ;;  %775 = vrot.lane.b32.xlu1 %v2092_v38, %s1947_s7  ;;  %v252_v54 = vpack.c.bf16 %v234_v51, %v232_v50  ;;  %v701_v55 = vpack.c.bf16 %v1744_v52, %v1744_v52  ;;  %v700_v57 = vpack.c.bf16 %v1743_v53, %v1743_v53  ;;  %v1735_v59 = vsel %vm644_vm11, 1.0, %v2926_v2 }
  0x29   : > { %v248_v58 = vsel %vm219_vm1, %v233_v49, %v245_v56  ;;  %vm645_vm12 = vcmp.gt.s32.totalorder %v577_v45, 0  ;;  %v2135_v62 = vpack.c.bf16 %v1735_v59, %v1735_v59  ;;  %v543_v4 = vadd.s32 768, %v2047_v3 }
  0x2a   : > { %1774 = vmatmul.mubr.msk.bf16.gmra.mrb[4].mxu0 %vm262_vm4, %v250_v34  ;;  %v253_v61 = vpack.c.bf16 %v248_v58, %v248_v58  ;;  %v1736_v63 = vsel %vm645_vm12, 1.0, %v2926_v2  ;;  %vm678_vm13 = vcmp.lt.s32.totalorder %v584_v0, 31  ;;  %vm646_vm15 = vcmp.gt.s32.totalorder %v584_v0, 0 }
  0x2b   : > { %1777 = vmatprep.mubr.msk.bf16.mxu0 %vm1945_vm0, %v2926_v2  ;;  %2942 = vst [vmem:[#allocation7_spill] sm:$0xff] %v2135_v62  ;;  %v2146_v5 = vpack.c.bf16 %v1736_v63, %v1736_v63  ;;  %v591_v6 = vand.u32 31, %v543_v4  ;;  %v1745_v7 = vsel %vm678_vm13, 1.0, %v2926_v2  ;;  %v1737_v11 = vsel %vm646_vm15, 1.0, %v2926_v2 }
  0x2c   : > { %813 = vrot.lane.b32.xlu0 %v2064_v15, %s1948_s8  ;;  %815 = vrot.lane.b32.xlu1 %v698_v31, %s1948_s8  ;;  %v702_v8 = vpack.c.bf16 %v1745_v7, %v1745_v7  ;;  %v544_v12 = vadd.s32 896, %v2047_v3  ;;  %v2162_v13 = vpack.c.bf16 %v1737_v11, %v1737_v11  ;;  %vm397_vm5 = vcmask 269312  }
  0x2d   : > { %2943 = vst [vmem:[#allocation8_spill] sm:$0xff] %v2146_v5  ;;  %vm679_vm14 = vcmp.lt.s32.totalorder %v591_v6, 31  ;;  %vm403_vm6 = vcmask 793600   ;;  %vm400_vm7 = vcmask 531456   ;;  %vm737_vm8 = vcmask 15360  }
  0x2e   : > { %v1746_v9 = vsel %vm679_vm14, 1.0, %v2926_v2  ;;  %2944 = vst [vmem:[#allocation9_spill] sm:$0xff] %v2162_v13  ;;  %vm829_vm9 = vcmask 277504   ;;  %vm467_vm10 = vcmask 523264   ;;  %vm463_vm11 = vcmask 261120  }
  0x2f   : > { %v703_v10 = vpack.c.bf16 %v1746_v9, %v1746_v9  ;;  %vm913_vm12 = vcmask 539648   ;;  %vm470_vm13 = vcmask 785408   ;;  %vm971_vm14 = vcmask 1039360  }
  0x30   : > { %817 = vrot.lane.b32.xlu0 %v2083_v30, %s1948_s8  ;;  %855 = vrot.lane.b32.xlu1 %v2066_v16, %s1949_s9  ;;  %vm1258_vm15 = vcmask 1041408  }
  0x32   : > { %1778 = vmatmul.mubr.msk.bf16.gmra.mrb[8].mxu0 %vm262_vm4, %v251_v47 }
  0x33   : > { %1781 = vmatprep.mubr.msk.bf16.mxu0 %vm1945_vm0, %v2926_v2 }
  0x34   : > { %857 = vrot.lane.b32.xlu0 %v2090_v35, %s1949_s9  ;;  %859 = vrot.lane.b32.xlu1 %v2092_v38, %s1949_s9 }
  0x38   : > { %729 = vrot.lane.b32.xlu0 %v701_v55, %s1946_s6  ;;  %727 = vrot.lane.b32.xlu1 %v700_v57, %s1946_s6 }
  0x3a   : > { %1782 = vmatmul.mubr.msk.bf16.gmra.mrb[12].mxu0 %vm262_vm4, %v252_v54 }
  0x3b   : > { %1785 = vmatprep.mubr.msk.bf16.mxu0 %vm1945_vm0, %v2926_v2  ;;  %vm647_vm0 = vcmp.gt.s32.totalorder %v591_v6, 0 }
  0x3c   : > { %899 = vrot.lane.b32.xlu0 %v698_v31, %s1950_s10  ;;  %897 = vrot.lane.b32.xlu1 %v2064_v15, %s1950_s10  ;;  %v1738_v14 = vsel %vm647_vm0, 1.0, %v2926_v2  ;;  %v598_v15 = vand.u32 31, %v544_v12  ;;  %vm1016_vm0 = vcmask 1031168  }
  0x3d   : > { %v2169_v17 = vpack.c.bf16 %v1738_v14, %v1738_v14 }
  0x3e   : > { %vm648_vm2 = vcmp.gt.s32.totalorder %v598_v15, 0  ;;  %vm680_vm3 = vcmp.lt.s32.totalorder %v598_v15, 31 }
  0x3f   : > { %2945 = vst [vmem:[#allocation10_spill] sm:$0xff] %v2169_v17  ;;  %v1739_v18 = vsel %vm648_vm2, 1.0, %v2926_v2  ;;  %v1747_v19 = vsel %vm680_vm3, 1.0, %v2926_v2  ;;  %vm1133_vm2 = vcmask 769024   ;;  %vm1088_vm3 = vcmask 777216  }
  0x40   : > { %777 = vrot.lane.b32.xlu0 %v2135_v62, %s1947_s7  ;;  %901 = vrot.lane.b32.xlu1 %v2083_v30, %s1950_s10  ;;  %v2178_v20 = vpack.c.bf16 %v1739_v18, %v1739_v18  ;;  %v704_v21 = vpack.c.bf16 %v1747_v19, %v1747_v19 }
  0x42   : > { %1786 = vmatmul.mubr.msk.bf16.gmra.mrb[16].mxu0 %vm262_vm4, %v253_v61  ;;  %2946 = vst [vmem:[#allocation11_spill] sm:$0xff] %v2178_v20  ;;  %vm393_vm4 = vcmask 7168  }
  0x44   : > { %819 = vrot.lane.b32.xlu0 %v700_v57, %s1948_s8  ;;  %779 = vrot.lane.b32.xlu1 %v2146_v5, %s1947_s7 }
  0x48   : > { %861 = vrot.lane.b32.xlu0 %v2135_v62, %s1949_s9  ;;  %821 = vrot.lane.b32.xlu1 %v701_v55, %s1948_s8 }
  0x4c   : > { %731 = vrot.lane.b32.xlu0 %v702_v8, %s1946_s6  ;;  %863 = vrot.lane.b32.xlu1 %v2146_v5, %s1949_s9 }
  0x50   : > { %903 = vrot.lane.b32.xlu0 %v700_v57, %s1950_s10  ;;  %733 = vrot.lane.b32.xlu1 %v703_v10, %s1946_s6 }
  0x54   : > { %781 = vrot.lane.b32.xlu0 %v2162_v13, %s1947_s7  ;;  %905 = vrot.lane.b32.xlu1 %v701_v55, %s1950_s10 }
  0x58   : > { %823 = vrot.lane.b32.xlu0 %v702_v8, %s1948_s8  ;;  %783 = vrot.lane.b32.xlu1 %v2169_v17, %s1947_s7 }
  0x5c   : > { %865 = vrot.lane.b32.xlu0 %v2162_v13, %s1949_s9  ;;  %825 = vrot.lane.b32.xlu1 %v703_v10, %s1948_s8 }
  0x60   : > { %785 = vrot.lane.b32.xlu0 %v2178_v20, %s1947_s7  ;;  %735 = vrot.lane.b32.xlu1 %v704_v21, %s1946_s6 }
  0x64   : > { %869 = vrot.lane.b32.xlu0 %v2178_v20, %s1949_s9  ;;  %867 = vrot.lane.b32.xlu1 %v2169_v17, %s1949_s9 }
  0x68   : > { %909 = vrot.lane.b32.xlu0 %v703_v10, %s1950_s10  ;;  %827 = vrot.lane.b32.xlu1 %v704_v21, %s1948_s8 }
  0x6c   : > { %907 = vrot.lane.b32.xlu1 %v702_v8, %s1950_s10 }
  0x70   : > { %911 = vrot.lane.b32.xlu1 %v704_v21, %s1950_s10  ;;  %s1757_s10 = sshll.u32 %s1934_s15, 5  ;;  %s1963_s15 = smov [#allocation2]  }
  0x92   : > { %v2192_v22 = vpop.permute.xlu1 %771  ;;  %v2203_v40 = vpop.permute.xlu0 %721 }
  0x96   : > { %v2195_v29 = vpop.permute.xlu1 %723  ;;  %v2212_v48 = vpop.permute.xlu0 %725 }
  0x9a   : > { %v2200_v36 = vpop.permute.xlu1 %775  ;;  %v2219_v54 = vpop.permute.xlu0 %773 }
  0x9e   : > { %v2207_v42 = vpop.permute.xlu1 %815  ;;  %v2229_v61 = vpop.permute.xlu0 %813 }
  0xa2   : > { %v2216_v50 = vpop.permute.xlu1 %855  ;;  %v2239_v9 = vpop.permute.xlu0 %817 }
  0xa6   : > { %v2225_v58 = vpop.permute.xlu1 %859  ;;  %v2249_v12 = vpop.permute.xlu0 %857 }
  0xaa   : > { %v2233_v4 = vpop.permute.xlu1 %727  ;;  %v2261_v19 = vpop.permute.xlu0 %729 }
  0xae   : > { %v2245_v10 = vpop.permute.xlu1 %897 }
  0xb2   : > { %v2252_v14 = vpop.permute.xlu1 %901 }
  0xf5   : > { %v312_v23 = vpop.f32.mrb[0].mxu0 }
  0xf6   : > { %v1771_v24 = vpop.f32.mrb[1].mxu0 }
  0xf7   : > { %v315_v25 = vpop.f32.mrb[2].mxu0 }
  0xf8   : > { %v350_v26 = vpack.c.bf16 %v315_v25, %v312_v23  ;;  %v1772_v27 = vpop.f32.mrb[3].mxu0  ;;  %v2266_v23 = vpop.permute.xlu1 %779 }
  0xf9   : > { %v2271_v25 = vpop.permute.xlu0 %899 }
  0xfa   : > { %356 = vrot.lane.b32.xlu0 %v350_v26, %s1951_s11  ;;  %v363_v28 = vrot.slane %v350_v26, 4  ;;  %v368_v31 = vrot.slane %v350_v26, 6  ;;  %v358_v39 = vrot.slane %v350_v26, 2 }
  0xfc   : > { %366 = vrot.lane.b32.xlu1 %v363_v28, %s1951_s11  ;;  %v2274_v26 = vpop.permute.xlu1 %821 }
  0xfd   : > { %v320_v30 = vpop.f32.mrb[4].mxu0  ;;  %v2279_v27 = vpop.permute.xlu0 %777 }
  0xfe   : > { %364 = vrot.lane.b32.xlu0 %v363_v28, %s1952_s18  ;;  %v1775_v32 = vpop.f32.mrb[5].mxu0 }
  0xff   : > { %v323_v33 = vpop.f32.mrb[6].mxu0 }
 0x100   : > { %369 = vrot.lane.b32.xlu1 %v368_v31, %s1953_s19  ;;  %v351_v34 = vpack.c.bf16 %v323_v33, %v320_v30  ;;  %v1776_v37 = vpop.f32.mrb[7].mxu0  ;;  %v2281_v28 = vpop.permute.xlu1 %863 }
 0x101   : > { %v2283_v30 = vpop.permute.xlu0 %819 }
 0x102   : > { %371 = vrot.lane.b32.xlu0 %v368_v31, %s1954_s21  ;;  %v378_v45 = vrot.slane %v351_v34, 2  ;;  %v383_v49 = vrot.slane %v351_v34, 4  ;;  %v388_v55 = vrot.slane %v351_v34, 6 }
 0x104   : > { %359 = vrot.lane.b32.xlu1 %v358_v39, %s1953_s19  ;;  %v2285_v31 = vpop.permute.xlu1 %733 }
 0x105   : > { %v328_v41 = vpop.f32.mrb[8].mxu0  ;;  %v2287_v32 = vpop.permute.xlu0 %861 }
 0x106   : > { %361 = vrot.lane.b32.xlu0 %v358_v39, %s1954_s21  ;;  %v1779_v43 = vpop.f32.mrb[9].mxu0 }
 0x107   : > { %v331_v44 = vpop.f32.mrb[10].mxu0 }
 0x108   : > { %376 = vrot.lane.b32.xlu1 %v351_v34, %s1951_s11  ;;  %v2210_v46 = vpack.c.bf16 %v331_v44, %v328_v41  ;;  %v1780_v47 = vpop.f32.mrb[11].mxu0 }
 0x109   : > { %v2289_v33 = vpop.permute.xlu0 %731 }
 0x10a   : > { %374 = vrot.lane.b32.xlu0 %v351_v34, %s1952_s18  ;;  %v434_v59 = vrot.slane %v2210_v46, 2  ;;  %v442_v6 = vrot.slane %v2210_v46, 6  ;;  %v2928_v8 = vrot.slane %v2210_v46, 4  ;;  %v2291_v34 = vpop.permute.xlu1 %905 }
 0x10c   : > { %381 = vrot.lane.b32.xlu1 %v378_v45, %s1954_s21 }
 0x10d   : > { %v336_v51 = vpop.f32.mrb[12].mxu0  ;;  %v2293_v37 = vpop.permute.xlu0 %903 }
 0x10e   : > { %379 = vrot.lane.b32.xlu0 %v378_v45, %s1953_s19  ;;  %v1783_v52 = vpop.f32.mrb[13].mxu0  ;;  %v2295_v39 = vpop.permute.xlu1 %783 }
 0x10f   : > { %v339_v53 = vpop.f32.mrb[14].mxu0 }
 0x110   : > { %384 = vrot.lane.b32.xlu1 %v383_v49, %s1952_s18  ;;  %v2222_v56 = vpack.c.bf16 %v339_v53, %v336_v51  ;;  %v1784_v57 = vpop.f32.mrb[15].mxu0 }
 0x111   : > { %v2297_v41 = vpop.permute.xlu0 %781 }
 0x112   : > { %386 = vrot.lane.b32.xlu0 %v383_v49, %s1951_s11  ;;  %v2927_v11 = vrot.slane %v2222_v56, 4  ;;  %v458_v15 = vrot.slane %v2222_v56, 6  ;;  %v450_v18 = vrot.slane %v2222_v56, 2  ;;  %v2299_v43 = vpop.permute.xlu1 %825 }
 0x114   : > { %389 = vrot.lane.b32.xlu1 %v388_v55, %s1953_s19 }
 0x115   : > { %v344_v60 = vpop.f32.mrb[16].mxu0  ;;  %v2301_v44 = vpop.permute.xlu0 %823 }
 0x116   : > { %391 = vrot.lane.b32.xlu0 %v388_v55, %s1954_s21  ;;  %v1787_v63 = vpop.f32.mrb[17].mxu0  ;;  %v2264_v21 = vpack.c.bf16 %v344_v60, %v344_v60  ;;  %v2303_v45 = vpop.permute.xlu1 %735  ;;  %s2874_s21 = scalar_lea.hbm %s2924_s3, %s1757_s10 }
 0x117   : > { %v347_v0 = vpop.f32.mrb[18].mxu0 }
 0x118   : > { %435 = vrot.lane.b32.xlu1 %v434_v59, %s1949_s9  ;;  %v1788_v7 = vpop.f32.mrb[19].mxu0  ;;  %v497_v24 = vrot.slane %v2264_v21, 2 }
 0x119   : > { %v2305_v47 = vpop.permute.xlu0 %865 }
 0x11a   : > { %432 = vrot.lane.b32.xlu0 %v2210_v46, %s1947_s7  ;;  %v2307_v49 = vpop.permute.xlu1 %867 }
 0x11c   : > { %443 = vrot.lane.b32.xlu1 %v442_v6, %s1949_s9 }
 0x11d   : > { %v2309_v51 = vpop.permute.xlu0 %785 }
 0x11e   : > { %440 = vrot.lane.b32.xlu0 %v2928_v8, %s1947_s7  ;;  %v2311_v52 = vpop.permute.xlu1 %827 }
 0x120   : > { %445 = vrot.lane.b32.xlu1 %v442_v6, %s1955_s23 }
 0x121   : > { %v2313_v53 = vpop.permute.xlu0 %869 }
 0x122   : > { %437 = vrot.lane.b32.xlu0 %v434_v59, %s1955_s23  ;;  %v2315_v55 = vpop.permute.xlu1 %907 }
 0x124   : > { %456 = vrot.lane.b32.xlu1 %v2927_v11, %s1947_s7 }
 0x125   : > { %v2317_v57 = vpop.permute.xlu0 %909 }
 0x126   : > { %448 = vrot.lane.b32.xlu0 %v2222_v56, %s1947_s7  ;;  %v2319_v59 = vpop.permute.xlu1 %911 }
 0x128   : > { %459 = vrot.lane.b32.xlu1 %v458_v15, %s1949_s9 }
 0x12a   : > { %451 = vrot.lane.b32.xlu0 %v450_v18, %s1949_s9 }
 0x12c   : > { %461 = vrot.lane.b32.xlu1 %v458_v15, %s1955_s23 }
 0x12e   : > { %453 = vrot.lane.b32.xlu0 %v450_v18, %s1955_s23 }
 0x130   : > { %498 = vrot.lane.b32.xlu1 %v497_v24, %s1949_s9 }
 0x132   : > { %495 = vrot.lane.b32.xlu0 %v2264_v21, %s1947_s7  ;;  %s173_s7 = sand.u32 1, %s1926_s13  }
 0x133   : > { %s1722_s8 = sshll.u32 %s173_s7, 1 }
 0x16c   : > { %v357_v60 = vpop.permute.xlu0 %356 }
 0x16d   : > { %v396_v15 = vsel %vm393_vm4, 0, %v357_v60 }
 0x16e   : > { %v367_v63 = vpop.permute.xlu1 %366 }
 0x170   : > { %v365_v0 = vpop.permute.xlu0 %364 }
 0x172   : > { %v370_v6 = vpop.permute.xlu1 %369 }
 0x174   : > { %v372_v7 = vpop.permute.xlu0 %371 }
 0x176   : > { %v360_v18 = vpop.permute.xlu1 %359 }
 0x177   : > { %v399_v24 = vsel %vm397_vm5, %v396_v15, %v360_v18 }
 0x178   : > { %v362_v1 = vpop.permute.xlu0 %361 }
 0x179   : > { %v402_v2 = vsel %vm400_vm7, %v399_v24, %v362_v1 }
 0x17a   : > { %v2325_v11 = vsel %vm403_vm6, %v402_v2, %v365_v0  ;;  %v377_v8 = vpop.permute.xlu1 %376  ;;  %v408_v2 = vsel %vm393_vm4, %v365_v0, %v367_v63 }
 0x17b   : > { %1070 = vrot.lane.b32.xlu1 %v2325_v11, %s1956_s26  ;;  %v944_v3 = vrot.slane %v2325_v11, 6  ;;  %v930_v15 = vmul.bf16 %v2245_v10, %v2325_v11  ;;  %v754_v1 = vmul.bf16 %v2203_v40, %v2325_v11  ;;  %v1186_v24 = vrot.slane %v2325_v11, 2 }
 0x17c   : > { %v375_v60 = vpop.permute.xlu0 %374  ;;  %v804_v17 = vmul.bf16 %v2192_v22, %v2325_v11  ;;  %v410_v5 = vsel %vm397_vm5, %v408_v2, %v370_v6  ;;  %v846_v0 = vmul.bf16 %v2229_v61, %v2325_v11 }
 0x17d   : > { %953 = vrot.lane.b32.xlu0 %v944_v3, %s1957_s27  ;;  %v989_v3 = vrot.slane %v754_v1, 4  ;;  %v412_v38 = vsel %vm400_vm7, %v410_v5, %v372_v7  ;;  %v888_v1 = vmul.bf16 %v2216_v50, %v2325_v11  ;;  %v738_v5 = vsel %vm737_vm8, %v2203_v40, %v2195_v29 }
 0x17e   : > { %v2335_v18 = vpop.permute.xlu1 %381  ;;  %v1034_v63 = vrot.slane %v804_v17, 2  ;;  %v2353_v6 = vsel %vm403_vm6, %v412_v38, %v375_v60 }
 0x17f   : > { %1231 = vrot.lane.b32.xlu1 %v930_v15, %s1958_s28  ;;  %v1151_v38 = vrot.slane %v888_v1, 4  ;;  %v417_v1 = vsel %vm393_vm4, %v375_v60, %v377_v8  ;;  %v914_v8 = vsel %vm913_vm12, %v2245_v10, %v2271_v25 }
 0x180   : > { %v380_v20 = vpop.permute.xlu0 %379 }
 0x181   : > { %1195 = vrot.lane.b32.xlu0 %v1186_v24, %s1959_s29  ;;  %v1106_v24 = vrot.slane %v846_v0, 6  ;;  %v830_v0 = vsel %vm829_vm9, %v2229_v61, %v2207_v42  ;;  %v872_v61 = vsel %vm467_vm10, %v2216_v50, %v2249_v12  ;;  %v419_v60 = vsel %vm397_vm5, %v417_v1, %v380_v20 }
 0x182   : > { %v385_v13 = vpop.permute.xlu1 %384  ;;  %v931_v50 = vmul.bf16 %v914_v8, %v2353_v6 }
 0x183   : > { %998 = vrot.lane.b32.xlu1 %v989_v3, %s1960_s30 }
 0x184   : > { %v387_v15 = vpop.permute.xlu0 %386 }
 0x185   : > { %v426_v62 = vsel %vm393_vm4, %v385_v13, %v387_v15  ;;  %1043 = vrot.lane.b32.xlu0 %v1034_v63, %s1955_s23  ;;  %v755_v63 = vmul.bf16 %v738_v5, %v2353_v6  ;;  %vm1299_vm4 = vcmask 1045504  }
 0x186   : > { %v390_v2 = vpop.permute.xlu1 %389 }
 0x187   : > { %v428_v17 = vsel %vm397_vm5, %v426_v62, %v390_v2  ;;  %1072 = vrot.lane.b32.xlu1 %v2353_v6, %s1956_s26  ;;  %v945_v62 = vrot.slane %v2353_v6, 6  ;;  %v990_v2 = vrot.slane %v755_v63, 4  ;;  %v788_v63 = vsel %vm463_vm11, %v2192_v22, %v2219_v54 }
 0x188   : > { %v392_v7 = vpop.permute.xlu0 %391  ;;  %vm1213_vm5 = vcmask 515072  }
 0x189   : > { %v2362_v3 = vsel %vm400_vm7, %v428_v17, %v392_v7  ;;  %1115 = vrot.lane.b32.xlu0 %v1106_v24, %s1961_s4  ;;  %v847_v17 = vmul.bf16 %v830_v0, %v2353_v6  ;;  %v1187_v24 = vrot.slane %v2353_v6, 2  ;;  %v805_v0 = vmul.bf16 %v788_v63, %v2353_v6 }
 0x18a   : > { %v2371_v40 = vpop.permute.xlu1 %435 }
 0x18b   : > { %1160 = vrot.lane.b32.xlu1 %v1151_v38, %s1949_s9  ;;  %v1107_v7 = vrot.slane %v847_v17, 6  ;;  %v889_v38 = vmul.bf16 %v872_v61, %v2353_v6  ;;  %v421_v17 = vsel %vm400_vm7, %v419_v60, %v2335_v18  ;;  %vm2937_vm7 = vcmask 506880  }
 0x18c   : > { %v433_v15 = vpop.permute.xlu0 %432  ;;  %v2398_v10 = vsel %vm403_vm6, %v421_v17, %v385_v13 }
 0x18d   : > { %955 = vrot.lane.b32.xlu0 %v945_v62, %s1957_s27  ;;  %v1152_v22 = vrot.slane %v889_v38, 4  ;;  %v946_v61 = vrot.slane %v2398_v10, 6  ;;  %v1188_v13 = vrot.slane %v2398_v10, 2  ;;  %v831_v38 = vsel %vm829_vm9, %v2207_v42, %v2239_v9 }
 0x18e   : > { %v444_v62 = vpop.permute.xlu1 %443 }
 0x18f   : > { %1000 = vrot.lane.b32.xlu1 %v990_v2, %s1960_s30 }
 0x190   : > { %v441_v5 = vpop.permute.xlu0 %440 }
 0x191   : > { %1197 = vrot.lane.b32.xlu0 %v1187_v24, %s1959_s29  ;;  %v1035_v24 = vrot.slane %v805_v0, 2  ;;  %v915_v0 = vsel %vm913_vm12, %v2271_v25, %v2252_v14 }
 0x192   : > { %v446_v20 = vpop.permute.xlu1 %445  ;;  %v932_v17 = vmul.bf16 %v915_v0, %v2398_v10 }
 0x193   : > { %1117 = vrot.lane.b32.xlu1 %v1107_v7, %s1961_s4  ;;  %v739_v7 = vsel %vm737_vm8, %v2195_v29, %v2212_v48  ;;  %v848_v29 = vmul.bf16 %v831_v38, %v2398_v10 }
 0x194   : > { %v438_v2 = vpop.permute.xlu0 %437  ;;  %v756_v18 = vmul.bf16 %v739_v7, %v2398_v10 }
 0x195   : > { %1233 = vrot.lane.b32.xlu0 %v931_v50, %s1958_s28  ;;  %v789_v50 = vsel %vm463_vm11, %v2219_v54, %v2200_v36 }
 0x196   : > { %v457_v63 = vpop.permute.xlu1 %456  ;;  %v991_v60 = vrot.slane %v756_v18, 4  ;;  %v806_v42 = vmul.bf16 %v789_v50, %v2398_v10  ;;  %v466_v18 = vsel %vm463_vm11, %v2210_v46, %v433_v15 }
 0x197   : > { %1162 = vrot.lane.b32.xlu1 %v1152_v22, %s1949_s9  ;;  %v873_v22 = vsel %vm467_vm10, %v2249_v12, %v2225_v58 }
 0x198   : > { %v449_v1 = vpop.permute.xlu0 %448  ;;  %v1036_v25 = vrot.slane %v806_v42, 2 }
 0x199   : > { %1045 = vrot.lane.b32.xlu0 %v1035_v24, %s1955_s23  ;;  %v1108_v24 = vrot.slane %v848_v29, 6 }
 0x19a   : > { %v460_v54 = vpop.permute.xlu1 %459 }
 0x19b   : > { %957 = vrot.lane.b32.xlu1 %v946_v61, %s1957_s27  ;;  %v890_v61 = vmul.bf16 %v873_v22, %v2398_v10 }
 0x19c   : > { %v452_v8 = vpop.permute.xlu0 %451 }
 0x19d   : > { %1074 = vrot.lane.b32.xlu0 %v2398_v10, %s1956_s26  ;;  %v1153_v12 = vrot.slane %v890_v61, 4 }
 0x19e   : > { %v462_v50 = vpop.permute.xlu1 %461 }
 0x19f   : > { %1199 = vrot.lane.b32.xlu1 %v1188_v13, %s1959_s29  ;;  %v2947_v13 = vrot.slane %v2210_v46, 4  ;;  %v2948_v46 = vrot.slane %v2222_v56, 4 }
 0x1a0   : > { %v454_v7 = vpop.permute.xlu0 %453 }
 0x1a1   : > { %1002 = vrot.lane.b32.xlu0 %v991_v60, %s1960_s30  ;;  %v475_v38 = vsel %vm463_vm11, %v2947_v13, %v441_v5  ;;  %v469_v60 = vsel %vm467_vm10, %v466_v18, %v2371_v40  ;;  %v489_v15 = vsel %vm463_vm11, %v2948_v46, %v457_v63  ;;  %v482_v40 = vsel %vm463_vm11, %v2222_v56, %v449_v1 }
 0x1a2   : > { %v477_v29 = vsel %vm467_vm10, %v475_v38, %v444_v62  ;;  %v472_v0 = vsel %vm470_vm13, %v469_v60, %v438_v2  ;;  %v491_v42 = vsel %vm467_vm10, %v489_v15, %v460_v54  ;;  %v499_v2 = vpop.permute.xlu1 %498 }
 0x1a3   : > { %1235 = vrot.lane.b32.xlu1 %v932_v17, %s1958_s28  ;;  %v479_v5 = vsel %vm470_vm13, %v477_v29, %v446_v20  ;;  %v493_v22 = vsel %vm470_vm13, %v491_v42, %v462_v50 }
 0x1a4   : > { %v496_v17 = vpop.permute.xlu0 %495 }
 0x1a5   : > { %1119 = vrot.lane.b32.xlu0 %v1108_v24, %s1961_s4  ;;  %v502_v62 = vsel %vm463_vm11, %v2264_v21, %v496_v17  ;;  %v484_v24 = vsel %vm467_vm10, %v482_v40, %v452_v8 }
 0x1a6   : > { %v486_v63 = vsel %vm470_vm13, %v484_v24, %v454_v7  ;;  %v504_v20 = vsel %vm467_vm10, %v502_v62, %v499_v2  ;;  %v705_v2 = vmul.bf16 %v2066_v16, %v2325_v11  ;;  %v2484_v24 = vsel %vm737_vm8, %v2212_v48, %v2233_v4 }
 0x1a7   : > { %1047 = vrot.lane.b32.xlu1 %v1036_v25, %s1955_s23  ;;  %v505_v61 = vsel %vm470_vm13, %v504_v20, 0 }
 0x1a9   : > { %1164 = vrot.lane.b32.xlu0 %v1153_v12, %s1949_s9 }
 0x1ab   : > { %510 = vrot.lane.b32.xlu1 %v472_v0, %s1952_s18 }
 0x1ad   : > { %512 = vrot.lane.b32.xlu0 %v479_v5, %s1952_s18 }
 0x1af   : > { %516 = vrot.lane.b32.xlu1 %v493_v22, %s1952_s18 }
 0x1b1   : > { %514 = vrot.lane.b32.xlu0 %v486_v63, %s1952_s18  ;;  %v706_v63 = vmul.bf16 %v2090_v35, %v2353_v6 }
 0x1b5   : > { %526 = vrot.lane.b32.xlu0 %v505_v61, %s1952_s18 }
 0x1ed   : > { %v1071_v56 = vpop.permute.xlu1 %1070 }
 0x1ef   : > { %v954_v1 = vpop.permute.xlu0 %953 }
 0x1f1   : > { %v2460_v21 = vpop.permute.xlu1 %1231 }
 0x1f3   : > { %v2462_v54 = vpop.permute.xlu0 %1195 }
 0x1f5   : > { %v999_v25 = vpop.permute.xlu1 %998 }
 0x1f7   : > { %v1044_v8 = vpop.permute.xlu0 %1043 }
 0x1f9   : > { %v1073_v18 = vpop.permute.xlu1 %1072 }
 0x1fb   : > { %v1116_v13 = vpop.permute.xlu0 %1115 }
 0x1fd   : > { %v1161_v38 = vpop.permute.xlu1 %1160 }
 0x1ff   : > { %v956_v7 = vpop.permute.xlu0 %955 }
 0x200   : > { %v972_v40 = vsel %vm971_vm14, %v954_v1, %v956_v7 }
 0x201   : > { %v1001_v12 = vpop.permute.xlu1 %1000  ;;  %v1261_v16 = vsel %vm1258_vm15, %v705_v2, %v972_v40 }
 0x202   : > { %v1017_v11 = vsel %vm1016_vm0, %v999_v25, %v1001_v12 }
 0x203   : > { %v1198_v60 = vpop.permute.xlu0 %1197 }
 0x205   : > { %v1118_v29 = vpop.permute.xlu1 %1117 }
 0x206   : > { %v1134_v1 = vsel %vm1133_vm2, %v1116_v13, %v1118_v29 }
 0x207   : > { %v2464_v50 = vpop.permute.xlu0 %1233 }
 0x209   : > { %v1163_v0 = vpop.permute.xlu1 %1162 }
 0x20b   : > { %v1046_v17 = vpop.permute.xlu0 %1045 }
 0x20d   : > { %v2466_v46 = vpop.permute.xlu1 %957 }
 0x20e   : > { %v973_v22 = vsel %vm971_vm14, %v956_v7, %v2466_v46  ;;  %v1062_v7 = vsel %vm470_vm13, %v1044_v8, %v1046_v17 }
 0x20f   : > { %v2468_v15 = vpop.permute.xlu0 %1074  ;;  %v1264_v48 = vsel %vm1258_vm15, %v706_v63, %v973_v22 }
 0x210   : > { %v1090_v8 = vsel %vm1088_vm3, %v1073_v18, %v2468_v15 }
 0x211   : > { %v2470_v5 = vpop.permute.xlu1 %1199 }
 0x213   : > { %v2472_v42 = vpop.permute.xlu0 %1002 }
 0x214   : > { %2949 = vst [vmem:[#allocation12_spill] sm:$0xff] %v2472_v42  ;;  %v1018_v20 = vsel %vm1016_vm0, %v1001_v12, %v2472_v42  ;;  %v1178_v42 = vsel %vm467_vm10, %v1161_v38, %v1163_v0  ;;  %v1089_v12 = vsel %vm1088_vm3, %v1071_v56, %v1073_v18  ;;  %v832_v56 = vsel %vm829_vm9, %v2239_v9, %v2283_v30 }
 0x215   : > { %v2475_v62 = vpop.permute.xlu1 %1235  ;;  %v1286_v25 = vsel %vm219_vm1, %v1264_v48, %v1018_v20  ;;  %v1326_v22 = vsel %vm1258_vm15, %v1089_v12, %v1134_v1  ;;  %v1215_v18 = vsel %vm1213_vm5, %v1198_v60, %v2470_v5 }
 0x217   : > { %v2490_v61 = vpop.permute.xlu0 %1119 }
 0x218   : > { %v1135_v35 = vsel %vm1133_vm2, %v1118_v29, %v2490_v61  ;;  %v1284_v29 = vsel %vm219_vm1, %v1261_v16, %v1017_v11  ;;  %v1349_v11 = vsel %vm219_vm1, %v1326_v22, %v1178_v42 }
 0x219   : > { %v2499_v6 = vpop.permute.xlu1 %1047  ;;  %v1329_v38 = vsel %vm1258_vm15, %v1090_v8, %v1135_v35  ;;  %v1301_v63 = vsel %vm1299_vm4, %v1284_v29, %v1062_v7  ;;  %v1214_v7 = vsel %vm1213_vm5, %v2462_v54, %v1198_v60  ;;  %v1250_v54 = vsel %vm2937_vm7, %v2460_v21, %v2464_v50 }
 0x21a   : > { %v1063_v40 = vsel %vm470_vm13, %v1046_v17, %v2499_v6  ;;  %v1365_v35 = vsel %vm1299_vm4, %v1349_v11, %v1214_v7  ;;  %v1251_v60 = vsel %vm2937_vm7, %v2464_v50, %v2475_v62  ;;  %v1394_v12 = vsel %vm1258_vm15, %v1250_v54, 0 }
 0x21b   : > { %v2508_v13 = vpop.permute.xlu0 %1164  ;;  %v1304_v2 = vsel %vm1299_vm4, %v1286_v25, %v1063_v40  ;;  %v741_v8 = vsel %vm737_vm8, %v2233_v4, %v2261_v19  ;;  %v791_v4 = vsel %vm463_vm11, %v2279_v27, %v2266_v23  ;;  %vm1389_vm7 = vcmask 293888  }
 0x21c   : > { %v1179_v17 = vsel %vm467_vm10, %v1163_v0, %v2508_v13  ;;  %1417 = vmatprep.subr.bf16.mxu1 %v1304_v2  ;;  %v916_v0 = vsel %vm913_vm12, %v2252_v14, %v2293_v37  ;;  %v917_v2 = vsel %vm913_vm12, %v2293_v37, %v2291_v34  ;;  %v875_v7 = vsel %vm467_vm10, %v2287_v32, %v2281_v28 }
 0x21d   : > { %1418 = vmatpush1.bf16.msra.mxu1 %v1301_v63  ;;  %v511_v20 = vpop.permute.xlu1 %510  ;;  %v1351_v16 = vsel %vm219_vm1, %v1329_v38, %v1179_v17  ;;  %v790_v38 = vsel %vm463_vm11, %v2200_v36, %v2279_v27  ;;  %v833_v27 = vsel %vm829_vm9, %v2283_v30, %v2274_v26 }
 0x21e   : > { %v2529_v1 = vsel %vm403_vm6, %v2362_v3, %v511_v20  ;;  %v1368_v9 = vsel %vm1299_vm4, %v1351_v16, %v1215_v18  ;;  %v2587_v18 = vld [vmem:[%s2923_s2] sm:$0xf] }
 0x21f   : > { %v2534_v48 = vpop.permute.xlu0 %512  ;;  %1419 = vmatprep.subr.bf16.mxu1 %v1368_v9  ;;  %1076 = vrot.lane.b32.xlu0 %v2529_v1, %s1956_s26  ;;  %v933_v42 = vmul.bf16 %v916_v0, %v2529_v1  ;;  %v757_v14 = vmul.bf16 %v2484_v24, %v2529_v1  ;;  %v849_v40 = vmul.bf16 %v832_v56, %v2529_v1  ;;  %v947_v24 = vrot.slane %v2529_v1, 6 }
 0x220   : > { %v2543_v3 = vsel %vm403_vm6, %v511_v20, %v2534_v48  ;;  %v1189_v21 = vrot.slane %v2529_v1, 2  ;;  %v807_v63 = vmul.bf16 %v790_v38, %v2529_v1  ;;  %v1962_v20 = vmov 0  }
 0x221   : > { %1420 = vmatpush1.bf16.msra.mxu1 %v1365_v35  ;;  %1078 = vrot.lane.b32.xlu1 %v2543_v3, %s1956_s26  ;;  %v948_v25 = vrot.slane %v2543_v3, 6  ;;  %v1190_v50 = vrot.slane %v2543_v3, 2  ;;  %v934_v29 = vmul.bf16 %v917_v2, %v2543_v3  ;;  %v758_v22 = vmul.bf16 %v741_v8, %v2543_v3 }
 0x222   : > { %1748 = vmatprep.subr.msk.bf16.mxu1 %vm1258_vm15, %v1251_v60  ;;  %v992_v17 = vrot.slane %v757_v14, 4  ;;  %v808_v56 = vmul.bf16 %v791_v4, %v2543_v3  ;;  %v1037_v36 = vrot.slane %v807_v63, 2  ;;  %1449 = vmatprep.mubr.bf16.mxu1 %v1962_v20  ;;  %v850_v11 = vmul.bf16 %v833_v27, %v2543_v3  ;;  %v517_v60 = vpop.permute.xlu1 %516 }
 0x223   : > { %959 = vrot.lane.b32.xlu0 %v947_v24, %s1957_s27  ;;  %v993_v37 = vrot.slane %v758_v22, 4  ;;  %1572 = vmatprep.mubr.bf16.mxu0 %v1962_v20  ;;  %v874_v0 = vsel %vm467_vm10, %v2225_v58, %v2287_v32  ;;  %v1109_v9 = vrot.slane %v849_v40, 6  ;;  %v892_v14 = vmul.bf16 %v875_v7, %v2543_v3  ;;  %v515_v54 = vpop.permute.xlu0 %514 }
 0x224   : > { %v1038_v16 = vrot.slane %v808_v56, 2  ;;  %v891_v30 = vmul.bf16 %v874_v0, %v2529_v1  ;;  %v2615_v40 = vsel %vm403_vm6, %v2534_v48, %v515_v54  ;;  %v2620_v32 = vsel %vm403_vm6, %v515_v54, %v517_v60 }
 0x225   : > { %1422 = vmatpush1.bf16.msra.mxu1 %v1394_v12  ;;  %961 = vrot.lane.b32.xlu1 %v948_v25, %s1957_s27  ;;  %v1155_v58 = vrot.slane %v892_v14, 4  ;;  %v949_v24 = vrot.slane %v2615_v40, 6  ;;  %v950_v25 = vrot.slane %v2620_v32, 6  ;;  %v742_v48 = vsel %vm737_vm8, %v2261_v19, %v2289_v33 }
 0x226   : > { %v1154_v35 = vrot.slane %v891_v30, 4  ;;  %v1191_v12 = vrot.slane %v2615_v40, 2  ;;  %v1192_v8 = vrot.slane %v2620_v32, 2  ;;  %v792_v19 = vsel %vm463_vm11, %v2266_v23, %v2297_v41 }
 0x227   : > { %1201 = vrot.lane.b32.xlu0 %v1189_v21, %s1959_s29  ;;  %v759_v21 = vmul.bf16 %v742_v48, %v2615_v40  ;;  %v809_v22 = vmul.bf16 %v792_v19, %v2615_v40  ;;  %v793_v38 = vsel %vm463_vm11, %v2297_v41, %v2295_v39  ;;  %v834_v63 = vsel %vm829_vm9, %v2274_v26, %v2301_v44 }
 0x228   : > { %1749 = vmatmul.mubr.msk.bf16.vlgmr.msra.gmra.mrb[0].mxu1 %vm1389_vm7, %v2587_v18  ;;  %v851_v4 = vmul.bf16 %v834_v63, %v2615_v40 }
 0x229   : > { %1203 = vrot.lane.b32.xlu1 %v1190_v50, %s1959_s29  ;;  %1490 = vmatprep.mubr.bf16.mxu1 %v1962_v20  ;;  %v743_v50 = vsel %vm737_vm8, %v2289_v33, %v2285_v31  ;;  %v1039_v23 = vrot.slane %v809_v22, 2 }
 0x22a   : > { %v760_v2 = vmul.bf16 %v743_v50, %v2620_v32  ;;  %v1111_v26 = vrot.slane %v851_v4, 6 }
 0x22b   : > { %1237 = vrot.lane.b32.xlu0 %v933_v42, %s1958_s28  ;;  %v1110_v42 = vrot.slane %v850_v11, 6 }
 0x22c   : > { %v995_v33 = vrot.slane %v760_v2, 4 }
 0x22d   : > { %1239 = vrot.lane.b32.xlu1 %v934_v29, %s1958_s28  ;;  %v994_v29 = vrot.slane %v759_v21, 4 }
 0x22f   : > { %1004 = vrot.lane.b32.xlu0 %v992_v17, %s1960_s30  ;;  %v810_v17 = vmul.bf16 %v793_v38, %v2620_v32  ;;  %v919_v38 = vsel %vm913_vm12, %v2315_v55, %v2317_v57 }
 0x231   : > { %1006 = vrot.lane.b32.xlu1 %v993_v37, %s1960_s30  ;;  %v835_v37 = vsel %vm829_vm9, %v2301_v44, %v2299_v43  ;;  %v1040_v41 = vrot.slane %v810_v17, 2 }
 0x232   : > { %v852_v56 = vmul.bf16 %v835_v37, %v2620_v32 }
 0x233   : > { %1049 = vrot.lane.b32.xlu0 %v1037_v36, %s1955_s23  ;;  %v876_v36 = vsel %vm467_vm10, %v2281_v28, %v2305_v47 }
 0x234   : > { %v893_v27 = vmul.bf16 %v876_v36, %v2615_v40  ;;  %v1112_v44 = vrot.slane %v852_v56, 6 }
 0x235   : > { %1051 = vrot.lane.b32.xlu1 %v1038_v16, %s1955_s23  ;;  %v877_v16 = vsel %vm467_vm10, %v2305_v47, %v2307_v49 }
 0x236   : > { %v894_v11 = vmul.bf16 %v877_v16, %v2620_v32  ;;  %v1156_v0 = vrot.slane %v893_v27, 4  ;;  %v2950_v16 = vld [vmem:[#allocation7_spill] sm:$0xff] }
 0x237   : > { %1121 = vrot.lane.b32.xlu0 %v1109_v9, %s1961_s4  ;;  %v527_v9 = vpop.permute.xlu0 %526 }
 0x238   : > { %v1157_v28 = vrot.slane %v894_v11, 4  ;;  %v2673_v30 = vsel %vm403_vm6, %v517_v60, %v527_v9  ;;  %v952_v7 = vrot.slane %v527_v9, 6  ;;  %v1194_v54 = vrot.slane %v527_v9, 2 }
 0x239   : > { %1123 = vrot.lane.b32.xlu1 %v1110_v42, %s1961_s4  ;;  %v951_v47 = vrot.slane %v2673_v30, 6  ;;  %v744_v42 = vsel %vm737_vm8, %v2285_v31, %v2303_v45  ;;  %v1193_v14 = vrot.slane %v2673_v30, 2  ;;  %v794_v60 = vsel %vm463_vm11, %v2295_v39, %v2309_v51 }
 0x23a   : > { %v811_v31 = vmul.bf16 %v794_v60, %v2673_v30  ;;  %v812_v48 = vmul.bf16 %v2309_v51, %v527_v9  ;;  %v854_v50 = vmul.bf16 %v2311_v52, %v527_v9  ;;  %v896_v19 = vmul.bf16 %v2313_v53, %v527_v9 }
 0x23b   : > { %1166 = vrot.lane.b32.xlu0 %v1154_v35, %s1949_s9  ;;  %v761_v35 = vmul.bf16 %v744_v42, %v2673_v30  ;;  %v938_v17 = vmul.bf16 %v2319_v59, %v527_v9  ;;  %vm2953_vm6 = vcmask 506880  }
 0x23c   : > { %v1042_v39 = vrot.slane %v812_v48, 2  ;;  %vm2954_vm8 = vmmov %vm2953_vm6 }
 0x23d   : > { %1168 = vrot.lane.b32.xlu1 %v1155_v58, %s1949_s9  ;;  %v762_v58 = vmul.bf16 %v2303_v45, %v527_v9  ;;  %v1041_v45 = vrot.slane %v811_v31, 2  ;;  %vm2960_vm11 = vmmov %vm2953_vm6 }
 0x23f   : > { %1080 = vrot.lane.b32.xlu0 %v2615_v40, %s1956_s26 }
 0x241   : > { %1082 = vrot.lane.b32.xlu1 %v2620_v32, %s1956_s26 }
 0x243   : > { %963 = vrot.lane.b32.xlu0 %v949_v24, %s1957_s27  ;;  %v996_v24 = vrot.slane %v761_v35, 4 }
 0x245   : > { %965 = vrot.lane.b32.xlu1 %v950_v25, %s1957_s27  ;;  %v997_v25 = vrot.slane %v762_v58, 4 }
 0x247   : > { %1205 = vrot.lane.b32.xlu0 %v1191_v12, %s1959_s29  ;;  %v836_v12 = vsel %vm829_vm9, %v2299_v43, %v2311_v52  ;;  %v1114_v43 = vrot.slane %v854_v50, 6  ;;  %v1159_v52 = vrot.slane %v896_v19, 4  ;;  %vm2959_vm9 = vmmov %vm2953_vm6 }
 0x248   : > { %v853_v21 = vmul.bf16 %v836_v12, %v2673_v30 }
 0x249   : > { %1207 = vrot.lane.b32.xlu1 %v1192_v8, %s1959_s29  ;;  %v878_v8 = vsel %vm467_vm10, %v2307_v49, %v2313_v53  ;;  %v918_v49 = vsel %vm913_vm12, %v2291_v34, %v2315_v55  ;;  %v936_v53 = vmul.bf16 %v919_v38, %v2620_v32 }
 0x24a   : > { %v1113_v51 = vrot.slane %v853_v21, 6  ;;  %v895_v2 = vmul.bf16 %v878_v8, %v2673_v30  ;;  %v935_v22 = vmul.bf16 %v918_v49, %v2615_v40 }
 0x24b   : > { %1008 = vrot.lane.b32.xlu0 %v994_v29, %s1960_s30 }
 0x24c   : > { %v1158_v29 = vrot.slane %v895_v2, 4 }
 0x24d   : > { %1010 = vrot.lane.b32.xlu1 %v995_v33, %s1960_s30  ;;  %v920_v33 = vsel %vm913_vm12, %v2317_v57, %v2319_v59  ;;  %vm1619_vm12 = vcmask 1040384  }
 0x24e   : > { %v937_v34 = vmul.bf16 %v920_v33, %v2673_v30 }
 0x24f   : > { %1053 = vrot.lane.b32.xlu0 %v1039_v23, %s1955_s23 }
 0x251   : > { %1055 = vrot.lane.b32.xlu1 %v1040_v41, %s1955_s23 }
 0x253   : > { %1125 = vrot.lane.b32.xlu0 %v1111_v26, %s1961_s4 }
 0x255   : > { %1127 = vrot.lane.b32.xlu1 %v1112_v44, %s1961_s4  ;;  %v708_v44 = vmul.bf16 %v2950_v16, %v2529_v1 }
 0x257   : > { %1170 = vrot.lane.b32.xlu0 %v1156_v0, %s1949_s9 }
 0x259   : > { %1172 = vrot.lane.b32.xlu1 %v1157_v28, %s1949_s9 }
 0x25b   : > { %1084 = vrot.lane.b32.xlu0 %v2673_v30, %s1956_s26 }
 0x25d   : > { %1086 = vrot.lane.b32.xlu1 %v527_v9, %s1956_s26  ;;  %v2951_v9 = vld [vmem:[#allocation6_spill] sm:$0xff] }
 0x25e   : > { %v707_v28 = vmul.bf16 %v2951_v9, %v2398_v10 }
 0x25f   : > { %967 = vrot.lane.b32.xlu0 %v951_v47, %s1957_s27  ;;  %v2952_v47 = vld [vmem:[#allocation12_spill] sm:$0xff] }
 0x261   : > { %969 = vrot.lane.b32.xlu1 %v952_v7, %s1957_s27  ;;  %s1868_s27 = sshll.u32 %s1963_s15, 4  ;;  %s1869_s27 = int_to_ptr.vmem [resolvable:$false] %s1868_s27 }
 0x263   : > { %1209 = vrot.lane.b32.xlu0 %v1193_v14, %s1959_s29 }
 0x265   : > { %1211 = vrot.lane.b32.xlu1 %v1194_v54, %s1959_s29 }
 0x267   : > { %1012 = vrot.lane.b32.xlu0 %v996_v24, %s1960_s30 }
 0x269   : > { %1014 = vrot.lane.b32.xlu1 %v997_v25, %s1960_s30 }
 0x26b   : > { %1057 = vrot.lane.b32.xlu0 %v1041_v45, %s1955_s23 }
 0x26d   : > { %1059 = vrot.lane.b32.xlu1 %v1042_v39, %s1955_s23  ;;  %s1631_s23 = scalar_lea.sflag [#allocation3], %s173_s7 }
 0x26f   : > { %1129 = vrot.lane.b32.xlu0 %v1113_v51, %s1961_s4 }
 0x271   : > { %1131 = vrot.lane.b32.xlu1 %v1114_v43, %s1961_s4 }
 0x273   : > { %1174 = vrot.lane.b32.xlu0 %v1158_v29, %s1949_s9 }
 0x275   : > { %1176 = vrot.lane.b32.xlu1 %v1159_v52, %s1949_s9  ;;  %s175_s9 = scalar_lea.vmem [#allocation2], %s1722_s8 }
 0x276   : > { %s1644_s11 = sshll.u32 %s175_s9, 4  ;;  %s2876_s11 = int_to_ptr.vmem [resolvable:$true] %s1644_s11 }
 0x277   : > { %1241 = vrot.lane.b32.xlu0 %v935_v22, %s1958_s28  ;;  %s1864_s26 = scalar_lea.vmem %s2876_s11, 32  ;;  %p1871_p1 = scmp.lt.s32.totalorder %s2876_s11, %s1869_s27 }
 0x278   : > { %p1865_p12 = scmp.ne.s32.totalorder %s2876_s11, %s1864_s26 }
 0x279   : > { %1243 = vrot.lane.b32.xlu1 %v936_v53, %s1958_s28 }
 0x27a   : > { %p1866_p13 = pnand %p1865_p12, %p2024_p4 }
 0x27b   : > { %1245 = vrot.lane.b32.xlu0 %v937_v34, %s1958_s28 }
 0x27c   : > { %p1867_p0 = pneg %p1866_p13 }
 0x27d   : > { %1247 = vrot.lane.b32.xlu1 %v938_v17, %s1958_s28  ;;  %s1870_s28 = scalar_lea.vmem %s1869_s27, 64 }
 0x27e   : > { %p1872_p2 = scmp.lt.s32.totalorder %s1870_s28, %s1864_s26 }
 0x280   : > { %p1873_p3 = por %p1872_p2, %p1871_p1 }
 0x282   : > { %p1874_p5 = pnand %p1873_p3, %p1867_p0 }
 0x291   : > { %v1077_v63 = vpop.permute.xlu0 %1076 }
 0x292   : > { %v1091_v12 = vsel %vm1088_vm3, %v2468_v15, %v1077_v63 }
 0x293   : > { %v2729_v55 = vpop.permute.xlu1 %1078 }
 0x294   : > { %v1092_v21 = vsel %vm1088_vm3, %v1077_v63, %v2729_v55 }
 0x295   : > { %v960_v23 = vpop.permute.xlu0 %959 }
 0x296   : > { %v974_v59 = vsel %vm971_vm14, %v2466_v46, %v960_v23 }
 0x297   : > { %v962_v4 = vpop.permute.xlu1 %961  ;;  %v1267_v46 = vsel %vm1258_vm15, %v707_v28, %v974_v59  ;;  %v2956_v59 = vld [vmem:[#allocation8_spill] sm:$0xff] }
 0x298   : > { %v975_v27 = vsel %vm971_vm14, %v960_v23, %v962_v4  ;;  %v709_v16 = vmul.bf16 %v2956_v59, %v2543_v3 }
 0x299   : > { %v1202_v37 = vpop.permute.xlu0 %1201  ;;  %v1270_v42 = vsel %vm1258_vm15, %v708_v44, %v975_v27 }
 0x29b   : > { %v2731_v41 = vpop.permute.xlu1 %1203 }
 0x29c   : > { %v1217_v2 = vsel %vm1213_vm5, %v1202_v37, %v2731_v41 }
 0x29d   : > { %v1238_v56 = vpop.permute.xlu0 %1237 }
 0x29e   : > { %v1252_v49 = vsel %vm2953_vm6, %v2475_v62, %v1238_v56 }
 0x29f   : > { %v2733_v57 = vpop.permute.xlu1 %1239  ;;  %v1400_v53 = vsel %vm1258_vm15, %v1252_v49, 0  ;;  %v2958_v49 = vld [vmem:[#allocation10_spill] sm:$0xff] }
 0x2a0   : > { %v1253_v22 = vsel %vm2954_vm8, %v1238_v56, %v2733_v57 }
 0x2a1   : > { %v1005_v36 = vpop.permute.xlu0 %1004 }
 0x2a2   : > { %v1019_v7 = vsel %vm1016_vm0, %v2952_v47, %v1005_v36 }
 0x2a3   : > { %v1007_v26 = vpop.permute.xlu1 %1006  ;;  %v1288_v58 = vsel %vm219_vm1, %v1267_v46, %v1019_v7 }
 0x2a4   : > { %v1020_v11 = vsel %vm1016_vm0, %v1005_v36, %v1007_v26 }
 0x2a5   : > { %v1050_v0 = vpop.permute.xlu0 %1049  ;;  %v1290_v1 = vsel %vm219_vm1, %v1270_v42, %v1020_v11 }
 0x2a6   : > { %v1064_v14 = vsel %vm470_vm13, %v2499_v6, %v1050_v0 }
 0x2a7   : > { %v1052_v35 = vpop.permute.xlu1 %1051  ;;  %v1307_v24 = vsel %vm1299_vm4, %v1288_v58, %v1064_v14 }
 0x2a8   : > { %v1065_v54 = vsel %vm470_vm13, %v1050_v0, %v1052_v35 }
 0x2a9   : > { %v1122_v60 = vpop.permute.xlu0 %1121  ;;  %v1310_v10 = vsel %vm1299_vm4, %v1290_v1, %v1065_v54 }
 0x2aa   : > { %1458 = vmatprep.subr.bf16.mxu1 %v1310_v10  ;;  %v1136_v6 = vsel %vm1133_vm2, %v2490_v61, %v1122_v60 }
 0x2ab   : > { %1459 = vmatpush1.bf16.msra.mxu1 %v1307_v24  ;;  %v1124_v31 = vpop.permute.xlu1 %1123  ;;  %v1332_v39 = vsel %vm1258_vm15, %v1091_v12, %v1136_v6 }
 0x2ac   : > { %v1137_v25 = vsel %vm1133_vm2, %v1122_v60, %v1124_v31 }
 0x2ad   : > { %v1167_v48 = vpop.permute.xlu0 %1166  ;;  %v1335_v8 = vsel %vm1258_vm15, %v1092_v21, %v1137_v25 }
 0x2ae   : > { %v1180_v45 = vsel %vm467_vm10, %v2508_v13, %v1167_v48  ;;  %v1216_v13 = vsel %vm1213_vm5, %v2470_v5, %v1202_v37  ;;  %v2955_v37 = vld [vmem:[#allocation9_spill] sm:$0xff] }
 0x2af   : > { %v1169_v50 = vpop.permute.xlu1 %1168  ;;  %v1353_v51 = vsel %vm219_vm1, %v1332_v39, %v1180_v45  ;;  %v710_v56 = vmul.bf16 %v2955_v37, %v2615_v40 }
 0x2b0   : > { %v1181_v61 = vsel %vm467_vm10, %v1167_v48, %v1169_v50  ;;  %v1371_v52 = vsel %vm1299_vm4, %v1353_v51, %v1216_v13  ;;  %v2957_v13 = vld [vmem:[#allocation11_spill] sm:$0xff] }
 0x2b1   : > { %v1081_v43 = vpop.permute.xlu0 %1080  ;;  %v1355_v15 = vsel %vm219_vm1, %v1335_v8, %v1181_v61 }
 0x2b2   : > { %v1374_v19 = vsel %vm1299_vm4, %v1355_v15, %v1217_v2  ;;  %v1093_v46 = vsel %vm1088_vm3, %v2729_v55, %v1081_v43 }
 0x2b3   : > { %1460 = vmatprep.subr.bf16.mxu1 %v1374_v19  ;;  %v2773_v29 = vpop.permute.xlu1 %1082 }
 0x2b4   : > { %1461 = vmatpush1.bf16.msra.mxu1 %v1371_v52  ;;  %v1094_v1 = vsel %vm1088_vm3, %v1081_v43, %v2773_v29 }
 0x2b5   : > { %v964_v38 = vpop.permute.xlu0 %963  ;;  %1750 = vmatprep.subr.msk.bf16.mxu1 %vm1258_vm15, %v1253_v22  ;;  %v711_v22 = vmul.bf16 %v2958_v49, %v2620_v32 }
 0x2b6   : > { %v976_v23 = vsel %vm971_vm14, %v962_v4, %v964_v38 }
 0x2b7   : > { %v966_v5 = vpop.permute.xlu1 %965  ;;  %v1273_v9 = vsel %vm1258_vm15, %v709_v16, %v976_v23 }
 0x2b8   : > { %1463 = vmatpush1.bf16.msra.mxu1 %v1400_v53  ;;  %v977_v63 = vsel %vm971_vm14, %v964_v38, %v966_v5 }
 0x2b9   : > { %v1206_v33 = vpop.permute.xlu0 %1205  ;;  %v1276_v11 = vsel %vm1258_vm15, %v710_v56, %v977_v63 }
 0x2ba   : > { %v1218_v48 = vsel %vm1213_vm5, %v2731_v41, %v1206_v33  ;;  %v712_v41 = vmul.bf16 %v2957_v13, %v2673_v30 }
 0x2bb   : > { %v2782_v34 = vpop.permute.xlu1 %1207  ;;  %1751 = vmatmul.mubr.msk.bf16.vlgmr.msra.gmra.mrb[4].mxu1 %vm1389_vm7, %v2587_v18 }
 0x2bc   : > { %1531 = vmatprep.mubr.bf16.mxu1 %v1962_v20  ;;  %v1219_v6 = vsel %vm1213_vm5, %v1206_v33, %v2782_v34 }
 0x2bd   : > { %v1009_v62 = vpop.permute.xlu0 %1008 }
 0x2be   : > { %v1021_v44 = vsel %vm1016_vm0, %v1007_v26, %v1009_v62 }
 0x2bf   : > { %v1011_v17 = vpop.permute.xlu1 %1010  ;;  %v1292_v40 = vsel %vm219_vm1, %v1273_v9, %v1021_v44 }
 0x2c0   : > { %v1022_v36 = vsel %vm1016_vm0, %v1009_v62, %v1011_v17 }
 0x2c1   : > { %v1054_v27 = vpop.permute.xlu0 %1053  ;;  %v1294_v28 = vsel %vm219_vm1, %v1276_v11, %v1022_v36 }
 0x2c2   : > { %v1066_v20 = vsel %vm470_vm13, %v1052_v35, %v1054_v27 }
 0x2c3   : > { %v1056_v0 = vpop.permute.xlu1 %1055  ;;  %v1313_v3 = vsel %vm1299_vm4, %v1292_v40, %v1066_v20 }
 0x2c4   : > { %v1067_v4 = vsel %vm470_vm13, %v1054_v27, %v1056_v0 }
 0x2c5   : > { %v1126_v47 = vpop.permute.xlu0 %1125  ;;  %v1316_v7 = vsel %vm1299_vm4, %v1294_v28, %v1067_v4 }
 0x2c6   : > { %1499 = vmatprep.subr.bf16.mxu1 %v1316_v7  ;;  %v1138_v42 = vsel %vm1133_vm2, %v1124_v31, %v1126_v47 }
 0x2c7   : > { %1500 = vmatpush1.bf16.msra.mxu1 %v1313_v3  ;;  %v1128_v26 = vpop.permute.xlu1 %1127  ;;  %v1338_v58 = vsel %vm1258_vm15, %v1093_v46, %v1138_v42 }
 0x2c8   : > { %v1139_v14 = vsel %vm1133_vm2, %v1126_v47, %v1128_v26 }
 0x2c9   : > { %v1171_v35 = vpop.permute.xlu0 %1170  ;;  %v1341_v10 = vsel %vm1258_vm15, %v1094_v1, %v1139_v14 }
 0x2ca   : > { %v1182_v54 = vsel %vm467_vm10, %v1169_v50, %v1171_v35 }
 0x2cb   : > { %v1173_v60 = vpop.permute.xlu1 %1172  ;;  %v1357_v24 = vsel %vm219_vm1, %v1338_v58, %v1182_v54 }
 0x2cc   : > { %v1183_v31 = vsel %vm467_vm10, %v1171_v35, %v1173_v60  ;;  %v1377_v21 = vsel %vm1299_vm4, %v1357_v24, %v1218_v48 }
 0x2cd   : > { %v1085_v25 = vpop.permute.xlu0 %1084  ;;  %v1359_v55 = vsel %vm219_vm1, %v1341_v10, %v1183_v31 }
 0x2ce   : > { %v1380_v12 = vsel %vm1299_vm4, %v1359_v55, %v1219_v6  ;;  %v1095_v16 = vsel %vm1088_vm3, %v2773_v29, %v1085_v25 }
 0x2cf   : > { %1501 = vmatprep.subr.bf16.mxu1 %v1380_v12  ;;  %v1087_v45 = vpop.permute.xlu1 %1086 }
 0x2d0   : > { %1502 = vmatpush1.bf16.msra.mxu1 %v1377_v21  ;;  %v1096_v11 = vsel %vm1088_vm3, %v1085_v25, %v1087_v45 }
 0x2d1   : > { %v968_v39 = vpop.permute.xlu0 %967 }
 0x2d2   : > { %v978_v15 = vsel %vm971_vm14, %v966_v5, %v968_v39 }
 0x2d3   : > { %v970_v50 = vpop.permute.xlu1 %969  ;;  %v1279_v63 = vsel %vm1258_vm15, %v711_v22, %v978_v15 }
 0x2d4   : > { %v979_v43 = vsel %vm971_vm14, %v968_v39, %v970_v50 }
 0x2d5   : > { %v1210_v8 = vpop.permute.xlu0 %1209  ;;  %v1282_v53 = vsel %vm1258_vm15, %v712_v41, %v979_v43 }
 0x2d6   : > { %v1220_v29 = vsel %vm1213_vm5, %v2782_v34, %v1210_v8 }
 0x2d7   : > { %v1212_v51 = vpop.permute.xlu1 %1211 }
 0x2d8   : > { %v1221_v40 = vsel %vm1213_vm5, %v1210_v8, %v1212_v51 }
 0x2d9   : > { %v1013_v61 = vpop.permute.xlu0 %1012 }
 0x2da   : > { %v1023_v38 = vsel %vm1016_vm0, %v1011_v17, %v1013_v61 }
 0x2db   : > { %v1015_v2 = vpop.permute.xlu1 %1014  ;;  %v1296_v30 = vsel %vm219_vm1, %v1279_v63, %v1023_v38 }
 0x2dc   : > { %v1024_v19 = vsel %vm1016_vm0, %v1013_v61, %v1015_v2 }
 0x2dd   : > { %v1058_v52 = vpop.permute.xlu0 %1057  ;;  %v1298_v23 = vsel %vm219_vm1, %v1282_v53, %v1024_v19 }
 0x2de   : > { %v1068_v33 = vsel %vm470_vm13, %v1056_v0, %v1058_v52 }
 0x2df   : > { %v1060_v62 = vpop.permute.xlu1 %1059  ;;  %v1319_v32 = vsel %vm1299_vm4, %v1296_v30, %v1068_v33 }
 0x2e0   : > { %v1069_v5 = vsel %vm470_vm13, %v1058_v52, %v1060_v62  ;;  %vm1621_vm13 = vcmask 64512  }
 0x2e1   : > { %v1130_v37 = vpop.permute.xlu0 %1129  ;;  %v1322_v56 = vsel %vm1299_vm4, %v1298_v23, %v1069_v5 }
 0x2e2   : > { %1540 = vmatprep.subr.bf16.mxu0 %v1322_v56  ;;  %v1140_v36 = vsel %vm1133_vm2, %v1128_v26, %v1130_v37 }
 0x2e3   : > { %1541 = vmatpush1.bf16.msra.mxu0 %v1319_v32  ;;  %v1132_v17 = vpop.permute.xlu1 %1131  ;;  %v1344_v20 = vsel %vm1258_vm15, %v1095_v16, %v1140_v36  ;;  %v2963_v36 = vmov 0.0   ;;  %v2965_v16 = vld [vmem:[#allocation5_spill] sm:$0xff] }
 0x2e4   : > { %v1141_v27 = vsel %vm1133_vm2, %v1130_v37, %v1132_v17  ;;  %1626 = vst [vmem:[%s175_s9] sm:$0x3] %v2963_v36 }
 0x2e5   : > { %v1175_v59 = vpop.permute.xlu0 %1174  ;;  %v1347_v9 = vsel %vm1258_vm15, %v1096_v11, %v1141_v27  ;;  %v2964_v27 = vlaneseq }
 0x2e6   : > { %v1184_v44 = vsel %vm467_vm10, %v1173_v60, %v1175_v59 }
 0x2e7   : > { %v1177_v0 = vpop.permute.xlu1 %1176  ;;  %v1361_v4 = vsel %vm219_vm1, %v1344_v20, %v1184_v44 }
 0x2e8   : > { %v1185_v28 = vsel %vm467_vm10, %v1175_v59, %v1177_v0  ;;  %v1383_v14 = vsel %vm1299_vm4, %v1361_v4, %v1220_v29  ;;  %v1609_v59 = vshrl.u32 %v2964_v27, 7 }
 0x2e9   : > { %v1242_v47 = vpop.permute.xlu0 %1241  ;;  %v1363_v7 = vsel %vm219_vm1, %v1347_v9, %v1185_v28  ;;  %vm2961_vm1 = vmmov %vm2953_vm6 }
 0x2ea   : > { %v1254_v3 = vsel %vm2959_vm9, %v2733_v57, %v1242_v47  ;;  %v1386_v26 = vsel %vm1299_vm4, %v1363_v7, %v1221_v40  ;;  %vm2962_vm10 = vmmov %vm2961_vm1  ;;  %v1610_v44 = vsub.s32 %v2965_v16, %v1609_v59 }
 0x2eb   : > { %1542 = vmatprep.subr.bf16.mxu0 %v1386_v26  ;;  %v1244_v42 = vpop.permute.xlu1 %1243  ;;  %v1406_v46 = vsel %vm1258_vm15, %v1254_v3, 0  ;;  %v1627_v4 = vld [vmem:[%s175_s9] sm:$0x3] }
 0x2ec   : > { %v1255_v35 = vsel %vm2960_vm11, %v1242_v47, %v1244_v42  ;;  %1543 = vmatpush1.bf16.msra.mxu0 %v1383_v14 }
 0x2ed   : > { %v1246_v54 = vpop.permute.xlu0 %1245  ;;  %1752 = vmatprep.subr.msk.bf16.mxu1 %vm1258_vm15, %v1255_v35 }
 0x2ee   : > { %v1256_v1 = vsel %vm2961_vm1, %v1244_v42, %v1246_v54  ;;  %1504 = vmatpush1.bf16.msra.mxu1 %v1406_v46 }
 0x2ef   : > { %v1248_v34 = vpop.permute.xlu1 %1247  ;;  %v1412_v58 = vsel %vm1258_vm15, %v1256_v1, 0 }
 0x2f0   : > { %v1257_v57 = vsel %vm2962_vm10, %v1246_v54, %v1248_v34 }
 0x2f1   : > { %1754 = vmatprep.subr.msk.bf16.mxu0 %vm1258_vm15, %v1257_v57  ;;  %1753 = vmatmul.mubr.msk.bf16.vlgmr.msra.gmra.mrb[8].mxu1 %vm1389_vm7, %v2587_v18 }
 0x2f2   : > { %1545 = vmatpush1.bf16.msra.mxu0 %v1412_v58 }
 0x2f5   : > { %1755 = vmatmul.mubr.msk.bf16.vlgmr.msra.gmra.mrb[20].mxu0 %vm1389_vm7, %v2587_v18 }
 0x2fb   : > { %v1451_v60 = vpop.f32.mrb[0].mxu1 }
 0x2fc   : > { %v1590_v10 = vmul.f32 %v1451_v60, %v1451_v60  ;;  %v1453_v24 = vpop.f32.mrb[1].mxu1 }
 0x2fd   : > { %v1581_v31 = vadd.f32 %v1453_v24, %v1451_v60  ;;  %v1591_v6 = vmul.f32 %v1453_v24, %v1453_v24  ;;  %v1455_v25 = vpop.f32.mrb[2].mxu1 }
 0x2fe   : > { %v1456_v55 = vpop.f32.mrb[3].mxu1 }
 0x2ff   : > { %v1598_v48 = vadd.f32 %v1591_v6, %v1590_v10 }
 0x38e   : > { %v1492_v12 = vpop.f32.mrb[4].mxu1 }
 0x38f   : > { %v1582_v45 = vadd.f32 %v1581_v31, %v1492_v12  ;;  %v1592_v21 = vmul.f32 %v1492_v12, %v1492_v12  ;;  %v1494_v39 = vpop.f32.mrb[5].mxu1 }
 0x390   : > { %v1593_v50 = vmul.f32 %v1494_v39, %v1494_v39  ;;  %v1496_v8 = vpop.f32.mrb[6].mxu1 }
 0x391   : > { %v1599_v51 = vadd.f32 %v1598_v48, %v1592_v21  ;;  %v1583_v61 = vadd.f32 %v1582_v45, %v1494_v39  ;;  %v1497_v2 = vpop.f32.mrb[7].mxu1 }
 0x393   : > { %v1600_v43 = vadd.f32 %v1599_v51, %v1593_v50 }
 0x3c4   : > { %v1533_v15 = vpop.f32.mrb[8].mxu1 }
 0x3c5   : > { %v1584_v18 = vadd.f32 %v1583_v61, %v1533_v15  ;;  %v1594_v13 = vmul.f32 %v1533_v15, %v1533_v15  ;;  %v1535_v41 = vpop.f32.mrb[9].mxu1 }
 0x3c6   : > { %v1595_v19 = vmul.f32 %v1535_v41, %v1535_v41  ;;  %v1537_v52 = vpop.f32.mrb[10].mxu1 }
 0x3c7   : > { %v1601_v49 = vadd.f32 %v1600_v43, %v1594_v13  ;;  %v1585_v22 = vadd.f32 %v1584_v18, %v1535_v41  ;;  %v1538_v38 = vpop.f32.mrb[11].mxu1 }
 0x3c8   : > { %v1574_v53 = vpop.f32.mrb[20].mxu0 }
 0x3c9   : > { %v1602_v33 = vadd.f32 %v1601_v49, %v1595_v19  ;;  %v1586_v62 = vadd.f32 %v1585_v22, %v1574_v53  ;;  %v1596_v63 = vmul.f32 %v1574_v53, %v1574_v53  ;;  %v1576_v5 = vpop.f32.mrb[21].mxu0 }
 0x3ca   : > { %v1597_v23 = vmul.f32 %v1576_v5, %v1576_v5  ;;  %v1578_v30 = vpop.f32.mrb[22].mxu0 }
 0x3cb   : > { %v1603_v37 = vadd.f32 %v1602_v33, %v1596_v63  ;;  %v1587_v56 = vadd.f32 %v1586_v62, %v1576_v5  ;;  %v1579_v32 = vpop.f32.mrb[23].mxu0 }
 0x3cd   : > { %v1604_v17 = vadd.f32 %v1603_v37, %v1597_v23  ;;  %1588 = vadd.xlane.f32.xlu0 %v1587_v56 }
 0x3cf   : > { %1605 = vadd.xlane.f32.xlu1 %v1604_v17 }
 0x45a   : > { %v1589_v11 = vpop.xlane.xlu0 %1588 }
 0x45b   : > { %v1611_v9 = vrot.slane %v1589_v11, %v1610_v44 }
 0x45c   : > { %v1606_v20 = vpop.xlane.xlu1 %1605 }
 0x45d   : > { %v1617_v0 = vrot.slane %v1606_v20, %v1610_v44 }
 0x45f   : > { %v1620_v28 = vsel %vm1619_vm12, %v1611_v9, %v1617_v0 }
 0x460   : > { %v1622_v40 = vsel %vm1621_vm13, %v1620_v28, 0.0 }
 0x461   : > { %v1628_v47 = vadd.f32 %v1627_v4, %v1622_v40 }
 0x463   : > { %1629 = vst [vmem:[%s175_s9] sm:$0x3] %v1628_v47 }
 0x464   : > { %1877 = shalt.err (!%p1874_p5)
}
 0x465   : > { %s1878_s29 = scalar_lea.hbm %s2874_s21, 32  ;;  %s1882_s5 = scalar_lea.hbm %s2924_s3, 64 }
 0x466   : > { %p1879_p6 = scmp.ne.s32.totalorder %s2874_s21, %s1878_s29  ;;  %p1883_p10 = scmp.lt.u32.totalorder %s2874_s21, %s2924_s3 }
 0x467   : > { %p1884_p11 = scmp.lt.u32.totalorder %s1882_s5, %s1878_s29  ;;  %p1886_p13 = scmp.lt.u32.totalorder %s1878_s29, %s2874_s21 }
 0x468   : > { %p1880_p7 = pnand %p1879_p6, %p2024_p4 }
 0x469   : > { %p1885_p12 = por %p1884_p11, %p1883_p10 }
 0x46a   : > { %p1881_p9 = pneg %p1880_p7 }
 0x46b   : > { %p1887_p0 = por %p1886_p13, %p1885_p12 }
 0x46d   : > { %p1888_p1 = pnand %p1887_p0, %p1881_p9 }
 0x46f   : > { %1891 = shalt.err (!%p1888_p1)
}
 0x470   : > { %1789 = dma.vmem_to_hbm [thread:$0]  (%p2024_p4), %s2876_s11, 32, %s2874_s21, %s1631_s23  }
 0x471 PF: > { %p1795_p2 = scmp.ge.s32.totalorder %s1942_s17, 2  ;;  %s1656_s8 = sand.u32 1, %s1922_s12  }
 0x472   : > { %s1657_s9 = scalar_lea.sflag [#allocation3], %s1656_s8 }
 0x473   : > { %p1792_p3 = pnand %p1795_p2, %p2031_p8 }
 0x475   : > { %1917 = dma.done.wait (!%p1792_p3), %s1657_s9, 32  }
 0x476   : > { %1919 = vsyncadd (!%p1792_p3), %s1657_s9, 4294967264  ;;  %s16_s17 = sadd.s32 1, %s1942_s17   ;;  %s2966_s12 = smov %s1926_s13 }
 0x477   : > { %p13_p5 = scmp.ge.s32.totalorder %s16_s17, 4   ;;  %s2967_s13 = smov %s1930_s14 }
 0x478   : > { %s2968_s14 = smov %s2037_s25  ;;  %s2969_s15 = smov %s1938_s16 }
 0x479   : > { %s2970_s16 = smov %s2972_s20  ;;  %15 = sbr.rel (!%p13_p5) target bundleno = 4 (0x4), region = 74 }
 0x480   :  { %1662 = vsyncpa [#allocation3], 1 }
 0x481   :  { %1664 = vsyncpa [#allocation3 + $0x1], 1 }

</bundles_post_ra>
